<compile_context>
chip_gen: v6e
topology: v6e:2x2x1
jax: 0.10.0
libtpu: 0.0.40
codegen_flags: <defaults>
</compile_context>

<pallas_src>
import functools

import jax
import jax.numpy as jnp
from jax.experimental import pallas as pl
from jax.experimental.pallas import tpu as pltpu


def _make_gru_kernel(T, Tc, Bp, Hp):
    """Build the chunked GRU recurrence kernel (T, Tc, Bp, Hp are static)."""
    needs_mask = (T % Tc) != 0
    unroll = True if Tc <= 32 else 16

    def kernel(x_ref, wi_ref, wh_ref, bi_ref, bhn_ref, out_ref, h_ref, gi_ref):
        # x_ref  : (Tc*Bp, Ip) f32  time-major input rows for this chunk
        # wi_ref : (Ip, 3Hp)   f32  fused input weights  [W_ir | W_iz | W_in]
        # wh_ref : (Hp, 3Hp)   f32  fused hidden weights [W_hr | W_hz | W_hn]
        # bi_ref : (1, 3Hp)    f32  [b_ir+b_hr | b_iz+b_hz | b_in]
        # bhn_ref: (1, Hp)     f32  b_hn (stays inside r * (.))
        # out_ref: (Bp, Hp)    f32  last hidden state h_T
        # h_ref  : (Bp, Hp)    f32  VMEM scratch carrying h across grid steps
        # gi_ref : (Tc*Bp,3Hp) f32  VMEM scratch: this chunk's input projections
        g = pl.program_id(0)
        n_g = pl.num_programs(0)

        @pl.when(g == 0)
        def _init():
            h_ref[...] = jnp.zeros_like(h_ref)

        # Fused input projection for the whole chunk: fully parallel MXU work,
        # off the serial critical path.  Combined biases added once per chunk.
        gi_ref[...] = (
            jnp.dot(x_ref[...], wi_ref[...], preferred_element_type=jnp.float32)
            + bi_ref[...]
        )

        wh = wh_ref[...]                                   # resident (Hp, 3Hp)
        bhn_b = jnp.broadcast_to(bhn_ref[...], (Bp, Hp))   # hoisted broadcast

        def step(t, h):
            row0 = pl.multiple_of(t * Bp, Bp)
            gi_t = gi_ref[pl.ds(row0, Bp), :]                          # (Bp, 3Hp)
            # Single fused MXU matmul for all three hidden gates.
            gh = jnp.dot(h, wh, preferred_element_type=jnp.float32)   # (Bp, 3Hp)

            gi_r, gi_z, gi_n = gi_t[:, :Hp], gi_t[:, Hp:2 * Hp], gi_t[:, 2 * Hp:]
            gh_r, gh_z, gh_n = gh[:, :Hp], gh[:, Hp:2 * Hp], gh[:, 2 * Hp:]

            # torch.nn.GRU gate math (gate order r, z, n).
            r = jax.nn.sigmoid(gi_r + gh_r)
            z = jax.nn.sigmoid(gi_z + gh_z)
            n = jnp.tanh(gi_n + r * (gh_n + bhn_b))
            h_new = n + z * (h - n)            # == (1 - z) * n + z * h
            if needs_mask:
                valid = (g * Tc + t) < T       # padded time steps pass h through
                h_new = jnp.where(valid, h_new, h)
            return h_new

        h_last = jax.lax.fori_loop(0, Tc, step, h_ref[...], unroll=unroll)
        h_ref[...] = h_last

        @pl.when(g == n_g - 1)
        def _finalize():
            out_ref[...] = h_last

    return kernel


@functools.partial(jax.jit, static_argnames=())
def encoder_forward(x_btI, params):
    """x_btI: (B, T, I) float32 (PyTorch batch_first layout). Returns (B, H)."""
    B, T, I = x_btI.shape
    H = params["whr"].shape[1]

    LANE, SUB = 128, 8
    Hp = ((H + LANE - 1) // LANE) * LANE           # lane-padded hidden width
    Ip = ((I + LANE - 1) // LANE) * LANE           # lane-padded input width
    Bp = ((B + SUB - 1) // SUB) * SUB              # sublane-padded batch
    f32 = jnp.float32

    # Time chunk: streamed via BlockSpec (double-buffered), keeps VMEM O(Tc).
    Tc = min(T, 64)
    n_chunks = -(-T // Tc)
    Tp = n_chunks * Tc

    def pad_cols(a, width):
        return jnp.pad(a, [(0, 0)] * (a.ndim - 1) + [(0, width - a.shape[-1])])

    # ---- fused + padded gate weights (gate order r, z, n), all f32 ----
    wi = jnp.concatenate(
        [pad_cols(params["wir"], Hp),
         pad_cols(params["wiz"], Hp),
         pad_cols(params["win"], Hp)], axis=1)
    wi = jnp.pad(wi, ((0, Ip - I), (0, 0))).astype(f32)               # (Ip, 3Hp)
    wh = jnp.concatenate(
        [pad_cols(params["whr"], Hp),
         pad_cols(params["whz"], Hp),
         pad_cols(params["whn"], Hp)], axis=1)
    wh = jnp.pad(wh, ((0, Hp - H), (0, 0))).astype(f32)               # (Hp, 3Hp)

    # ---- pre-combined biases ----
    # r, z: b_i* + b_h* folded together; n: b_in here, b_hn stays inside r*(.)
    b_i = jnp.concatenate(
        [pad_cols(params["bir"] + params["bhr"], Hp),
         pad_cols(params["biz"] + params["bhz"], Hp),
         pad_cols(params["bin"], Hp)], axis=1).astype(f32)            # (1, 3Hp)
    b_hn = pad_cols(params["bhn"], Hp).astype(f32)                    # (1, Hp)

    # ---- time-major, padded x: (Tp*Bp, Ip) with zero padding ----
    x_tm = jnp.transpose(x_btI.astype(f32), (1, 0, 2))                # (T, B, I)
    x_tm = jnp.pad(x_tm, ((0, Tp - T), (0, Bp - B), (0, Ip - I)))
    x_tm = x_tm.reshape(Tp * Bp, Ip)

    kernel = _make_gru_kernel(T, Tc, Bp, Hp)

    out = pl.pallas_call(
        kernel,
        out_shape=jax.ShapeDtypeStruct((Bp, Hp), f32),
        grid=(n_chunks,),
        in_specs=[
            pl.BlockSpec((Tc * Bp, Ip), lambda g: (g, 0)),   # x chunk (streamed)
            pl.BlockSpec((Ip, 3 * Hp), lambda g: (0, 0)),    # fused W_i (resident)
            pl.BlockSpec((Hp, 3 * Hp), lambda g: (0, 0)),    # fused W_h (resident)
            pl.BlockSpec((1, 3 * Hp), lambda g: (0, 0)),     # combined biases
            pl.BlockSpec((1, Hp), lambda g: (0, 0)),         # b_hn
        ],
        out_specs=pl.BlockSpec((Bp, Hp), lambda g: (0, 0)),
        scratch_shapes=[
            pltpu.VMEM((Bp, Hp), f32),            # hidden-state carry
            pltpu.VMEM((Tc * Bp, 3 * Hp), f32),   # per-chunk input projections
        ],
        compiler_params=pltpu.CompilerParams(
            dimension_semantics=("arbitrary",),   # serial recurrence axis
            # Headroom on v5e/v6e (128 MiB) while staying under v7x's 64 MiB.
            vmem_limit_bytes=48 * 1024 * 1024,
        ),
    )(x_tm, wi, wh, b_i, b_hn)

    return out[:B, :H]


def init_gru_params(key, input_dim, hidden_dim):
    """Deterministic init matching nn.GRU parameter shapes (gate order r,z,n).

    Weights stored pre-transposed as (in_features, H) so x @ W is used; biases
    stored as (1, H)."""
    k = 1.0 / jnp.sqrt(hidden_dim)
    keys = jax.random.split(key, 12)
    u = lambda kk, shape: jax.random.uniform(kk, shape, jnp.float32, -k, k)
    p = {}
    for i, name in enumerate(["wir", "wiz", "win"]):
        p[name] = u(keys[i], (input_dim, hidden_dim))
    for i, name in enumerate(["whr", "whz", "whn"]):
        p[name] = u(keys[3 + i], (hidden_dim, hidden_dim))
    for i, name in enumerate(["bir", "biz", "bin"]):
        p[name] = u(keys[6 + i], (1, hidden_dim))
    for i, name in enumerate(["bhr", "bhz", "bhn"]):
        p[name] = u(keys[9 + i], (1, hidden_dim))
    return p


def encoder_reference(x_btI, params):
    """Independent pure-JAX GRU reference (torch.nn.GRU math), all f32."""
    B, T, I = x_btI.shape
    H = params["whr"].shape[1]
    mm = lambda a, w: jnp.dot(a, w, preferred_element_type=jnp.float32)
    h0 = jnp.zeros((B, H), jnp.float32)

    def step(h, x_t):
        i_r = mm(x_t, params["wir"]) + params["bir"]
        i_z = mm(x_t, params["wiz"]) + params["biz"]
        i_n = mm(x_t, params["win"]) + params["bin"]
        h_r = mm(h, params["whr"]) + params["bhr"]
        h_z = mm(h, params["whz"]) + params["bhz"]
        h_n = mm(h, params["whn"]) + params["bhn"]
        r = jax.nn.sigmoid(i_r + h_r)
        z = jax.nn.sigmoid(i_z + h_z)
        n = jnp.tanh(i_n + r * h_n)
        return (1.0 - z) * n + z * h, None

    h_last, _ = jax.lax.scan(step, h0, jnp.transpose(x_btI, (1, 0, 2)))
    return h_last


if __name__ == "__main__":
    B, T, I, H = 2, 8, 4, 32
    key = jax.random.PRNGKey(0)
    kx, kp = jax.random.split(key)
    x = jax.random.normal(kx, (B, T, I), jnp.float32)
    params = init_gru_params(kp, I, H)

    out = jax.block_until_ready(encoder_forward(x, params))

    ref = encoder_reference(x, params)
    assert out.shape == (B, H)
    assert jnp.allclose(out, ref, atol=1e-4, rtol=1e-4), (
        f"max abs diff {jnp.max(jnp.abs(out - ref))}"
    )
    print("KERNEL_OK")
</pallas_src>

<mosaic_0001>
module attributes {stable_mosaic.version = 11 : i64} {
  func.func @kernel(%arg0: i32, %arg1: memref<64x128xf32, #tpu.memory_space<vmem>>, %arg2: memref<128x384xf32, #tpu.memory_space<vmem>>, %arg3: memref<128x384xf32, #tpu.memory_space<vmem>>, %arg4: memref<1x384xf32, #tpu.memory_space<vmem>>, %arg5: memref<1x128xf32, #tpu.memory_space<vmem>>, %arg6: memref<8x128xf32, #tpu.memory_space<vmem>>, %arg7: memref<8x128xf32, #tpu.memory_space<vmem>>, %arg8: memref<64x384xf32, #tpu.memory_space<vmem>>) attributes {dimension_semantics = [#tpu.dimension_semantics<arbitrary>], iteration_bounds = array<i64: 1>, scalar_prefetch = 0 : i64, scratch_operands = 2 : i64, tpu.core_type = #tpu.core_type<tc>, window_params = [{transform_indices = @transform_0, window_bounds = array<i64: 64, 128>}, {pipeline_mode = #tpu.pipeline_mode<synchronous>, transform_indices = @transform_1, window_bounds = array<i64: 128, 384>}, {pipeline_mode = #tpu.pipeline_mode<synchronous>, transform_indices = @transform_2, window_bounds = array<i64: 128, 384>}, {pipeline_mode = #tpu.pipeline_mode<synchronous>, transform_indices = @transform_3, window_bounds = array<i64: 1, 384>}, {pipeline_mode = #tpu.pipeline_mode<synchronous>, transform_indices = @transform_4, window_bounds = array<i64: 1, 128>}, {pipeline_mode = #tpu.pipeline_mode<synchronous>, transform_indices = @transform_5, window_bounds = array<i64: 8, 128>}]} {
    %c0_i32 = arith.constant 0 : i32
    %0 = arith.cmpi eq, %arg0, %c0_i32 : i32
    %1 = arith.extui %0 : i1 to i32
    %c0_i32_0 = arith.constant 0 : i32
    %2 = arith.cmpi ne, %1, %c0_i32_0 : i32
    scf.if %2 {
      %cst_59 = arith.constant 0.000000e+00 : f32
      %259 = vector.broadcast %cst_59 : f32 to vector<8x128xf32>
      %c0_60 = arith.constant 0 : index
      %c0_61 = arith.constant 0 : index
      %260 = vector.load %arg7[%c0_60, %c0_61] : memref<8x128xf32, #tpu.memory_space<vmem>>, vector<8x128xf32>
      tpu.vector_store %arg7[%c0_60, %c0_61], %259 {strides = array<i32>} : memref<8x128xf32, #tpu.memory_space<vmem>>, vector<8x128xf32>,
    } else {
    }
    %c0 = arith.constant 0 : index
    %c0_1 = arith.constant 0 : index
    %3 = vector.load %arg1[%c0, %c0_1] : memref<64x128xf32, #tpu.memory_space<vmem>>, vector<64x128xf32>
    %c0_2 = arith.constant 0 : index
    %c0_3 = arith.constant 0 : index
    %4 = vector.load %arg2[%c0_2, %c0_3] : memref<128x384xf32, #tpu.memory_space<vmem>>, vector<128x384xf32>
    %cst = arith.constant dense<0.000000e+00> : vector<64x384xf32>
    %5 = tpu.matmul %3, %4, %cst {dimension_numbers = #tpu.dot_dimension_numbers<[1], [0], [0], [1], [0, 0, 1, 1], [], []>} : vector<64x128xf32>, vector<128x384xf32>, vector<64x384xf32> -> vector<64x384xf32>
    %c0_4 = arith.constant 0 : index
    %c0_5 = arith.constant 0 : index
    %6 = vector.load %arg4[%c0_4, %c0_5] : memref<1x384xf32, #tpu.memory_space<vmem>>, vector<1x384xf32>
    %7 = vector.broadcast %6 : vector<1x384xf32> to vector<64x384xf32>
    %8 = arith.addf %5, %7 : vector<64x384xf32>
    %c0_6 = arith.constant 0 : index
    %c0_7 = arith.constant 0 : index
    %9 = vector.load %arg8[%c0_6, %c0_7] : memref<64x384xf32, #tpu.memory_space<vmem>>, vector<64x384xf32>
    tpu.vector_store %arg8[%c0_6, %c0_7], %8 {strides = array<i32>} : memref<64x384xf32, #tpu.memory_space<vmem>>, vector<64x384xf32>,
    %c0_8 = arith.constant 0 : index
    %c0_9 = arith.constant 0 : index
    %10 = vector.load %arg3[%c0_8, %c0_9] : memref<128x384xf32, #tpu.memory_space<vmem>>, vector<128x384xf32>
    %c0_10 = arith.constant 0 : index
    %c0_11 = arith.constant 0 : index
    %11 = vector.load %arg5[%c0_10, %c0_11] : memref<1x128xf32, #tpu.memory_space<vmem>>, vector<1x128xf32>
    %12 = vector.shape_cast %11 : vector<1x128xf32> to vector<1x128xf32>
    %13 = vector.broadcast %12 : vector<1x128xf32> to vector<8x128xf32>
    %c0_12 = arith.constant 0 : index
    %c0_13 = arith.constant 0 : index
    %14 = vector.load %arg7[%c0_12, %c0_13] : memref<8x128xf32, #tpu.memory_space<vmem>>, vector<8x128xf32>
    %c0_i32_14 = arith.constant 0 : i32
    %c8_i32 = arith.constant 8 : i32
    %15 = arith.muli %c0_i32_14, %c8_i32 : i32
    %16 = tpu.assume_multiple %15, 8 : i32
    %17 = arith.index_cast %16 : i32 to index
    %c0_15 = arith.constant 0 : index
    %18 = vector.load %arg8[%17, %c0_15] : memref<64x384xf32, #tpu.memory_space<vmem>>, vector<8x384xf32>
    %cst_16 = arith.constant dense<0.000000e+00> : vector<8x384xf32>
    %19 = tpu.matmul %14, %10, %cst_16 {dimension_numbers = #tpu.dot_dimension_numbers<[1], [0], [0], [1], [0, 0, 1, 1], [], []>} : vector<8x128xf32>, vector<128x384xf32>, vector<8x384xf32> -> vector<8x384xf32>
    %20 = vector.extract_strided_slice %18 {offsets = [0, 0], sizes = [8, 128], strides = [1, 1]} : vector<8x384xf32> to vector<8x128xf32>
    %21 = vector.extract_strided_slice %18 {offsets = [0, 128], sizes = [8, 128], strides = [1, 1]} : vector<8x384xf32> to vector<8x128xf32>
    %22 = vector.extract_strided_slice %18 {offsets = [0, 256], sizes = [8, 128], strides = [1, 1]} : vector<8x384xf32> to vector<8x128xf32>
    %23 = vector.extract_strided_slice %19 {offsets = [0, 0], sizes = [8, 128], strides = [1, 1]} : vector<8x384xf32> to vector<8x128xf32>
    %24 = vector.extract_strided_slice %19 {offsets = [0, 128], sizes = [8, 128], strides = [1, 1]} : vector<8x384xf32> to vector<8x128xf32>
    %25 = vector.extract_strided_slice %19 {offsets = [0, 256], sizes = [8, 128], strides = [1, 1]} : vector<8x384xf32> to vector<8x128xf32>
    %26 = arith.addf %20, %23 : vector<8x128xf32>
    %27 = arith.negf %26 : vector<8x128xf32>
    %28 = math.exp %27 : vector<8x128xf32>
    %cst_17 = arith.constant 1.000000e+00 : f32
    %29 = vector.broadcast %cst_17 : f32 to vector<8x128xf32>
    %30 = arith.addf %29, %28 : vector<8x128xf32>
    %31 = arith.divf %29, %30 : vector<8x128xf32>
    %32 = arith.addf %21, %24 : vector<8x128xf32>
    %33 = arith.negf %32 : vector<8x128xf32>
    %34 = math.exp %33 : vector<8x128xf32>
    %cst_18 = arith.constant 1.000000e+00 : f32
    %35 = vector.broadcast %cst_18 : f32 to vector<8x128xf32>
    %36 = arith.addf %35, %34 : vector<8x128xf32>
    %37 = arith.divf %35, %36 : vector<8x128xf32>
    %38 = arith.addf %25, %13 : vector<8x128xf32>
    %39 = arith.mulf %31, %38 : vector<8x128xf32>
    %40 = arith.addf %22, %39 : vector<8x128xf32>
    %41 = math.tanh %40 : vector<8x128xf32>
    %42 = arith.subf %14, %41 : vector<8x128xf32>
    %43 = arith.mulf %37, %42 : vector<8x128xf32>
    %44 = arith.addf %41, %43 : vector<8x128xf32>
    %c1_i32 = arith.constant 1 : i32
    %c8_i32_19 = arith.constant 8 : i32
    %45 = arith.muli %c1_i32, %c8_i32_19 : i32
    %46 = tpu.assume_multiple %45, 8 : i32
    %47 = arith.index_cast %46 : i32 to index
    %c0_20 = arith.constant 0 : index
    %48 = vector.load %arg8[%47, %c0_20] : memref<64x384xf32, #tpu.memory_space<vmem>>, vector<8x384xf32>
    %cst_21 = arith.constant dense<0.000000e+00> : vector<8x384xf32>
    %49 = tpu.matmul %44, %10, %cst_21 {dimension_numbers = #tpu.dot_dimension_numbers<[1], [0], [0], [1], [0, 0, 1, 1], [], []>} : vector<8x128xf32>, vector<128x384xf32>, vector<8x384xf32> -> vector<8x384xf32>
    %50 = vector.extract_strided_slice %48 {offsets = [0, 0], sizes = [8, 128], strides = [1, 1]} : vector<8x384xf32> to vector<8x128xf32>
    %51 = vector.extract_strided_slice %48 {offsets = [0, 128], sizes = [8, 128], strides = [1, 1]} : vector<8x384xf32> to vector<8x128xf32>
    %52 = vector.extract_strided_slice %48 {offsets = [0, 256], sizes = [8, 128], strides = [1, 1]} : vector<8x384xf32> to vector<8x128xf32>
    %53 = vector.extract_strided_slice %49 {offsets = [0, 0], sizes = [8, 128], strides = [1, 1]} : vector<8x384xf32> to vector<8x128xf32>
    %54 = vector.extract_strided_slice %49 {offsets = [0, 128], sizes = [8, 128], strides = [1, 1]} : vector<8x384xf32> to vector<8x128xf32>
    %55 = vector.extract_strided_slice %49 {offsets = [0, 256], sizes = [8, 128], strides = [1, 1]} : vector<8x384xf32> to vector<8x128xf32>
    %56 = arith.addf %50, %53 : vector<8x128xf32>
    %57 = arith.negf %56 : vector<8x128xf32>
    %58 = math.exp %57 : vector<8x128xf32>
    %cst_22 = arith.constant 1.000000e+00 : f32
    %59 = vector.broadcast %cst_22 : f32 to vector<8x128xf32>
    %60 = arith.addf %59, %58 : vector<8x128xf32>
    %61 = arith.divf %59, %60 : vector<8x128xf32>
    %62 = arith.addf %51, %54 : vector<8x128xf32>
    %63 = arith.negf %62 : vector<8x128xf32>
    %64 = math.exp %63 : vector<8x128xf32>
    %cst_23 = arith.constant 1.000000e+00 : f32
    %65 = vector.broadcast %cst_23 : f32 to vector<8x128xf32>
    %66 = arith.addf %65, %64 : vector<8x128xf32>
    %67 = arith.divf %65, %66 : vector<8x128xf32>
    %68 = arith.addf %55, %13 : vector<8x128xf32>
    %69 = arith.mulf %61, %68 : vector<8x128xf32>
    %70 = arith.addf %52, %69 : vector<8x128xf32>
    %71 = math.tanh %70 : vector<8x128xf32>
    %72 = arith.subf %44, %71 : vector<8x128xf32>
    %73 = arith.mulf %67, %72 : vector<8x128xf32>
    %74 = arith.addf %71, %73 : vector<8x128xf32>
    %c2_i32 = arith.constant 2 : i32
    %c8_i32_24 = arith.constant 8 : i32
    %75 = arith.muli %c2_i32, %c8_i32_24 : i32
    %76 = tpu.assume_multiple %75, 8 : i32
    %77 = arith.index_cast %76 : i32 to index
    %c0_25 = arith.constant 0 : index
    %78 = vector.load %arg8[%77, %c0_25] : memref<64x384xf32, #tpu.memory_space<vmem>>, vector<8x384xf32>
    %cst_26 = arith.constant dense<0.000000e+00> : vector<8x384xf32>
    %79 = tpu.matmul %74, %10, %cst_26 {dimension_numbers = #tpu.dot_dimension_numbers<[1], [0], [0], [1], [0, 0, 1, 1], [], []>} : vector<8x128xf32>, vector<128x384xf32>, vector<8x384xf32> -> vector<8x384xf32>
    %80 = vector.extract_strided_slice %78 {offsets = [0, 0], sizes = [8, 128], strides = [1, 1]} : vector<8x384xf32> to vector<8x128xf32>
    %81 = vector.extract_strided_slice %78 {offsets = [0, 128], sizes = [8, 128], strides = [1, 1]} : vector<8x384xf32> to vector<8x128xf32>
    %82 = vector.extract_strided_slice %78 {offsets = [0, 256], sizes = [8, 128], strides = [1, 1]} : vector<8x384xf32> to vector<8x128xf32>
    %83 = vector.extract_strided_slice %79 {offsets = [0, 0], sizes = [8, 128], strides = [1, 1]} : vector<8x384xf32> to vector<8x128xf32>
    %84 = vector.extract_strided_slice %79 {offsets = [0, 128], sizes = [8, 128], strides = [1, 1]} : vector<8x384xf32> to vector<8x128xf32>
    %85 = vector.extract_strided_slice %79 {offsets = [0, 256], sizes = [8, 128], strides = [1, 1]} : vector<8x384xf32> to vector<8x128xf32>
    %86 = arith.addf %80, %83 : vector<8x128xf32>
    %87 = arith.negf %86 : vector<8x128xf32>
    %88 = math.exp %87 : vector<8x128xf32>
    %cst_27 = arith.constant 1.000000e+00 : f32
    %89 = vector.broadcast %cst_27 : f32 to vector<8x128xf32>
    %90 = arith.addf %89, %88 : vector<8x128xf32>
    %91 = arith.divf %89, %90 : vector<8x128xf32>
    %92 = arith.addf %81, %84 : vector<8x128xf32>
    %93 = arith.negf %92 : vector<8x128xf32>
    %94 = math.exp %93 : vector<8x128xf32>
    %cst_28 = arith.constant 1.000000e+00 : f32
    %95 = vector.broadcast %cst_28 : f32 to vector<8x128xf32>
    %96 = arith.addf %95, %94 : vector<8x128xf32>
    %97 = arith.divf %95, %96 : vector<8x128xf32>
    %98 = arith.addf %85, %13 : vector<8x128xf32>
    %99 = arith.mulf %91, %98 : vector<8x128xf32>
    %100 = arith.addf %82, %99 : vector<8x128xf32>
    %101 = math.tanh %100 : vector<8x128xf32>
    %102 = arith.subf %74, %101 : vector<8x128xf32>
    %103 = arith.mulf %97, %102 : vector<8x128xf32>
    %104 = arith.addf %101, %103 : vector<8x128xf32>
    %c3_i32 = arith.constant 3 : i32
    %c8_i32_29 = arith.constant 8 : i32
    %105 = arith.muli %c3_i32, %c8_i32_29 : i32
    %106 = tpu.assume_multiple %105, 8 : i32
    %107 = arith.index_cast %106 : i32 to index
    %c0_30 = arith.constant 0 : index
    %108 = vector.load %arg8[%107, %c0_30] : memref<64x384xf32, #tpu.memory_space<vmem>>, vector<8x384xf32>
    %cst_31 = arith.constant dense<0.000000e+00> : vector<8x384xf32>
    %109 = tpu.matmul %104, %10, %cst_31 {dimension_numbers = #tpu.dot_dimension_numbers<[1], [0], [0], [1], [0, 0, 1, 1], [], []>} : vector<8x128xf32>, vector<128x384xf32>, vector<8x384xf32> -> vector<8x384xf32>
    %110 = vector.extract_strided_slice %108 {offsets = [0, 0], sizes = [8, 128], strides = [1, 1]} : vector<8x384xf32> to vector<8x128xf32>
    %111 = vector.extract_strided_slice %108 {offsets = [0, 128], sizes = [8, 128], strides = [1, 1]} : vector<8x384xf32> to vector<8x128xf32>
    %112 = vector.extract_strided_slice %108 {offsets = [0, 256], sizes = [8, 128], strides = [1, 1]} : vector<8x384xf32> to vector<8x128xf32>
    %113 = vector.extract_strided_slice %109 {offsets = [0, 0], sizes = [8, 128], strides = [1, 1]} : vector<8x384xf32> to vector<8x128xf32>
    %114 = vector.extract_strided_slice %109 {offsets = [0, 128], sizes = [8, 128], strides = [1, 1]} : vector<8x384xf32> to vector<8x128xf32>
    %115 = vector.extract_strided_slice %109 {offsets = [0, 256], sizes = [8, 128], strides = [1, 1]} : vector<8x384xf32> to vector<8x128xf32>
    %116 = arith.addf %110, %113 : vector<8x128xf32>
    %117 = arith.negf %116 : vector<8x128xf32>
    %118 = math.exp %117 : vector<8x128xf32>
    %cst_32 = arith.constant 1.000000e+00 : f32
    %119 = vector.broadcast %cst_32 : f32 to vector<8x128xf32>
    %120 = arith.addf %119, %118 : vector<8x128xf32>
    %121 = arith.divf %119, %120 : vector<8x128xf32>
    %122 = arith.addf %111, %114 : vector<8x128xf32>
    %123 = arith.negf %122 : vector<8x128xf32>
    %124 = math.exp %123 : vector<8x128xf32>
    %cst_33 = arith.constant 1.000000e+00 : f32
    %125 = vector.broadcast %cst_33 : f32 to vector<8x128xf32>
    %126 = arith.addf %125, %124 : vector<8x128xf32>
    %127 = arith.divf %125, %126 : vector<8x128xf32>
    %128 = arith.addf %115, %13 : vector<8x128xf32>
    %129 = arith.mulf %121, %128 : vector<8x128xf32>
    %130 = arith.addf %112, %129 : vector<8x128xf32>
    %131 = math.tanh %130 : vector<8x128xf32>
    %132 = arith.subf %104, %131 : vector<8x128xf32>
    %133 = arith.mulf %127, %132 : vector<8x128xf32>
    %134 = arith.addf %131, %133 : vector<8x128xf32>
    %c4_i32 = arith.constant 4 : i32
    %c8_i32_34 = arith.constant 8 : i32
    %135 = arith.muli %c4_i32, %c8_i32_34 : i32
    %136 = tpu.assume_multiple %135, 8 : i32
    %137 = arith.index_cast %136 : i32 to index
    %c0_35 = arith.constant 0 : index
    %138 = vector.load %arg8[%137, %c0_35] : memref<64x384xf32, #tpu.memory_space<vmem>>, vector<8x384xf32>
    %cst_36 = arith.constant dense<0.000000e+00> : vector<8x384xf32>
    %139 = tpu.matmul %134, %10, %cst_36 {dimension_numbers = #tpu.dot_dimension_numbers<[1], [0], [0], [1], [0, 0, 1, 1], [], []>} : vector<8x128xf32>, vector<128x384xf32>, vector<8x384xf32> -> vector<8x384xf32>
    %140 = vector.extract_strided_slice %138 {offsets = [0, 0], sizes = [8, 128], strides = [1, 1]} : vector<8x384xf32> to vector<8x128xf32>
    %141 = vector.extract_strided_slice %138 {offsets = [0, 128], sizes = [8, 128], strides = [1, 1]} : vector<8x384xf32> to vector<8x128xf32>
    %142 = vector.extract_strided_slice %138 {offsets = [0, 256], sizes = [8, 128], strides = [1, 1]} : vector<8x384xf32> to vector<8x128xf32>
    %143 = vector.extract_strided_slice %139 {offsets = [0, 0], sizes = [8, 128], strides = [1, 1]} : vector<8x384xf32> to vector<8x128xf32>
    %144 = vector.extract_strided_slice %139 {offsets = [0, 128], sizes = [8, 128], strides = [1, 1]} : vector<8x384xf32> to vector<8x128xf32>
    %145 = vector.extract_strided_slice %139 {offsets = [0, 256], sizes = [8, 128], strides = [1, 1]} : vector<8x384xf32> to vector<8x128xf32>
    %146 = arith.addf %140, %143 : vector<8x128xf32>
    %147 = arith.negf %146 : vector<8x128xf32>
    %148 = math.exp %147 : vector<8x128xf32>
    %cst_37 = arith.constant 1.000000e+00 : f32
    %149 = vector.broadcast %cst_37 : f32 to vector<8x128xf32>
    %150 = arith.addf %149, %148 : vector<8x128xf32>
    %151 = arith.divf %149, %150 : vector<8x128xf32>
    %152 = arith.addf %141, %144 : vector<8x128xf32>
    %153 = arith.negf %152 : vector<8x128xf32>
    %154 = math.exp %153 : vector<8x128xf32>
    %cst_38 = arith.constant 1.000000e+00 : f32
    %155 = vector.broadcast %cst_38 : f32 to vector<8x128xf32>
    %156 = arith.addf %155, %154 : vector<8x128xf32>
    %157 = arith.divf %155, %156 : vector<8x128xf32>
    %158 = arith.addf %145, %13 : vector<8x128xf32>
    %159 = arith.mulf %151, %158 : vector<8x128xf32>
    %160 = arith.addf %142, %159 : vector<8x128xf32>
    %161 = math.tanh %160 : vector<8x128xf32>
    %162 = arith.subf %134, %161 : vector<8x128xf32>
    %163 = arith.mulf %157, %162 : vector<8x128xf32>
    %164 = arith.addf %161, %163 : vector<8x128xf32>
    %c5_i32 = arith.constant 5 : i32
    %c8_i32_39 = arith.constant 8 : i32
    %165 = arith.muli %c5_i32, %c8_i32_39 : i32
    %166 = tpu.assume_multiple %165, 8 : i32
    %167 = arith.index_cast %166 : i32 to index
    %c0_40 = arith.constant 0 : index
    %168 = vector.load %arg8[%167, %c0_40] : memref<64x384xf32, #tpu.memory_space<vmem>>, vector<8x384xf32>
    %cst_41 = arith.constant dense<0.000000e+00> : vector<8x384xf32>
    %169 = tpu.matmul %164, %10, %cst_41 {dimension_numbers = #tpu.dot_dimension_numbers<[1], [0], [0], [1], [0, 0, 1, 1], [], []>} : vector<8x128xf32>, vector<128x384xf32>, vector<8x384xf32> -> vector<8x384xf32>
    %170 = vector.extract_strided_slice %168 {offsets = [0, 0], sizes = [8, 128], strides = [1, 1]} : vector<8x384xf32> to vector<8x128xf32>
    %171 = vector.extract_strided_slice %168 {offsets = [0, 128], sizes = [8, 128], strides = [1, 1]} : vector<8x384xf32> to vector<8x128xf32>
    %172 = vector.extract_strided_slice %168 {offsets = [0, 256], sizes = [8, 128], strides = [1, 1]} : vector<8x384xf32> to vector<8x128xf32>
    %173 = vector.extract_strided_slice %169 {offsets = [0, 0], sizes = [8, 128], strides = [1, 1]} : vector<8x384xf32> to vector<8x128xf32>
    %174 = vector.extract_strided_slice %169 {offsets = [0, 128], sizes = [8, 128], strides = [1, 1]} : vector<8x384xf32> to vector<8x128xf32>
    %175 = vector.extract_strided_slice %169 {offsets = [0, 256], sizes = [8, 128], strides = [1, 1]} : vector<8x384xf32> to vector<8x128xf32>
    %176 = arith.addf %170, %173 : vector<8x128xf32>
    %177 = arith.negf %176 : vector<8x128xf32>
    %178 = math.exp %177 : vector<8x128xf32>
    %cst_42 = arith.constant 1.000000e+00 : f32
    %179 = vector.broadcast %cst_42 : f32 to vector<8x128xf32>
    %180 = arith.addf %179, %178 : vector<8x128xf32>
    %181 = arith.divf %179, %180 : vector<8x128xf32>
    %182 = arith.addf %171, %174 : vector<8x128xf32>
    %183 = arith.negf %182 : vector<8x128xf32>
    %184 = math.exp %183 : vector<8x128xf32>
    %cst_43 = arith.constant 1.000000e+00 : f32
    %185 = vector.broadcast %cst_43 : f32 to vector<8x128xf32>
    %186 = arith.addf %185, %184 : vector<8x128xf32>
    %187 = arith.divf %185, %186 : vector<8x128xf32>
    %188 = arith.addf %175, %13 : vector<8x128xf32>
    %189 = arith.mulf %181, %188 : vector<8x128xf32>
    %190 = arith.addf %172, %189 : vector<8x128xf32>
    %191 = math.tanh %190 : vector<8x128xf32>
    %192 = arith.subf %164, %191 : vector<8x128xf32>
    %193 = arith.mulf %187, %192 : vector<8x128xf32>
    %194 = arith.addf %191, %193 : vector<8x128xf32>
    %c6_i32 = arith.constant 6 : i32
    %c8_i32_44 = arith.constant 8 : i32
    %195 = arith.muli %c6_i32, %c8_i32_44 : i32
    %196 = tpu.assume_multiple %195, 8 : i32
    %197 = arith.index_cast %196 : i32 to index
    %c0_45 = arith.constant 0 : index
    %198 = vector.load %arg8[%197, %c0_45] : memref<64x384xf32, #tpu.memory_space<vmem>>, vector<8x384xf32>
    %cst_46 = arith.constant dense<0.000000e+00> : vector<8x384xf32>
    %199 = tpu.matmul %194, %10, %cst_46 {dimension_numbers = #tpu.dot_dimension_numbers<[1], [0], [0], [1], [0, 0, 1, 1], [], []>} : vector<8x128xf32>, vector<128x384xf32>, vector<8x384xf32> -> vector<8x384xf32>
    %200 = vector.extract_strided_slice %198 {offsets = [0, 0], sizes = [8, 128], strides = [1, 1]} : vector<8x384xf32> to vector<8x128xf32>
    %201 = vector.extract_strided_slice %198 {offsets = [0, 128], sizes = [8, 128], strides = [1, 1]} : vector<8x384xf32> to vector<8x128xf32>
    %202 = vector.extract_strided_slice %198 {offsets = [0, 256], sizes = [8, 128], strides = [1, 1]} : vector<8x384xf32> to vector<8x128xf32>
    %203 = vector.extract_strided_slice %199 {offsets = [0, 0], sizes = [8, 128], strides = [1, 1]} : vector<8x384xf32> to vector<8x128xf32>
    %204 = vector.extract_strided_slice %199 {offsets = [0, 128], sizes = [8, 128], strides = [1, 1]} : vector<8x384xf32> to vector<8x128xf32>
    %205 = vector.extract_strided_slice %199 {offsets = [0, 256], sizes = [8, 128], strides = [1, 1]} : vector<8x384xf32> to vector<8x128xf32>
    %206 = arith.addf %200, %203 : vector<8x128xf32>
    %207 = arith.negf %206 : vector<8x128xf32>
    %208 = math.exp %207 : vector<8x128xf32>
    %cst_47 = arith.constant 1.000000e+00 : f32
    %209 = vector.broadcast %cst_47 : f32 to vector<8x128xf32>
    %210 = arith.addf %209, %208 : vector<8x128xf32>
    %211 = arith.divf %209, %210 : vector<8x128xf32>
    %212 = arith.addf %201, %204 : vector<8x128xf32>
    %213 = arith.negf %212 : vector<8x128xf32>
    %214 = math.exp %213 : vector<8x128xf32>
    %cst_48 = arith.constant 1.000000e+00 : f32
    %215 = vector.broadcast %cst_48 : f32 to vector<8x128xf32>
    %216 = arith.addf %215, %214 : vector<8x128xf32>
    %217 = arith.divf %215, %216 : vector<8x128xf32>
    %218 = arith.addf %205, %13 : vector<8x128xf32>
    %219 = arith.mulf %211, %218 : vector<8x128xf32>
    %220 = arith.addf %202, %219 : vector<8x128xf32>
    %221 = math.tanh %220 : vector<8x128xf32>
    %222 = arith.subf %194, %221 : vector<8x128xf32>
    %223 = arith.mulf %217, %222 : vector<8x128xf32>
    %224 = arith.addf %221, %223 : vector<8x128xf32>
    %c7_i32 = arith.constant 7 : i32
    %c8_i32_49 = arith.constant 8 : i32
    %225 = arith.muli %c7_i32, %c8_i32_49 : i32
    %226 = tpu.assume_multiple %225, 8 : i32
    %227 = arith.index_cast %226 : i32 to index
    %c0_50 = arith.constant 0 : index
    %228 = vector.load %arg8[%227, %c0_50] : memref<64x384xf32, #tpu.memory_space<vmem>>, vector<8x384xf32>
    %cst_51 = arith.constant dense<0.000000e+00> : vector<8x384xf32>
    %229 = tpu.matmul %224, %10, %cst_51 {dimension_numbers = #tpu.dot_dimension_numbers<[1], [0], [0], [1], [0, 0, 1, 1], [], []>} : vector<8x128xf32>, vector<128x384xf32>, vector<8x384xf32> -> vector<8x384xf32>
    %230 = vector.extract_strided_slice %228 {offsets = [0, 0], sizes = [8, 128], strides = [1, 1]} : vector<8x384xf32> to vector<8x128xf32>
    %231 = vector.extract_strided_slice %228 {offsets = [0, 128], sizes = [8, 128], strides = [1, 1]} : vector<8x384xf32> to vector<8x128xf32>
    %232 = vector.extract_strided_slice %228 {offsets = [0, 256], sizes = [8, 128], strides = [1, 1]} : vector<8x384xf32> to vector<8x128xf32>
    %233 = vector.extract_strided_slice %229 {offsets = [0, 0], sizes = [8, 128], strides = [1, 1]} : vector<8x384xf32> to vector<8x128xf32>
    %234 = vector.extract_strided_slice %229 {offsets = [0, 128], sizes = [8, 128], strides = [1, 1]} : vector<8x384xf32> to vector<8x128xf32>
    %235 = vector.extract_strided_slice %229 {offsets = [0, 256], sizes = [8, 128], strides = [1, 1]} : vector<8x384xf32> to vector<8x128xf32>
    %236 = arith.addf %230, %233 : vector<8x128xf32>
    %237 = arith.negf %236 : vector<8x128xf32>
    %238 = math.exp %237 : vector<8x128xf32>
    %cst_52 = arith.constant 1.000000e+00 : f32
    %239 = vector.broadcast %cst_52 : f32 to vector<8x128xf32>
    %240 = arith.addf %239, %238 : vector<8x128xf32>
    %241 = arith.divf %239, %240 : vector<8x128xf32>
    %242 = arith.addf %231, %234 : vector<8x128xf32>
    %243 = arith.negf %242 : vector<8x128xf32>
    %244 = math.exp %243 : vector<8x128xf32>
    %cst_53 = arith.constant 1.000000e+00 : f32
    %245 = vector.broadcast %cst_53 : f32 to vector<8x128xf32>
    %246 = arith.addf %245, %244 : vector<8x128xf32>
    %247 = arith.divf %245, %246 : vector<8x128xf32>
    %248 = arith.addf %235, %13 : vector<8x128xf32>
    %249 = arith.mulf %241, %248 : vector<8x128xf32>
    %250 = arith.addf %232, %249 : vector<8x128xf32>
    %251 = math.tanh %250 : vector<8x128xf32>
    %252 = arith.subf %224, %251 : vector<8x128xf32>
    %253 = arith.mulf %247, %252 : vector<8x128xf32>
    %254 = arith.addf %251, %253 : vector<8x128xf32>
    %c8_i32_54 = arith.constant 8 : i32
    %c0_55 = arith.constant 0 : index
    %c0_56 = arith.constant 0 : index
    %255 = vector.load %arg7[%c0_55, %c0_56] : memref<8x128xf32, #tpu.memory_space<vmem>>, vector<8x128xf32>
    tpu.vector_store %arg7[%c0_55, %c0_56], %254 {strides = array<i32>} : memref<8x128xf32, #tpu.memory_space<vmem>>, vector<8x128xf32>,
    %c0_i32_57 = arith.constant 0 : i32
    %256 = arith.cmpi eq, %arg0, %c0_i32_57 : i32
    %257 = arith.extui %256 : i1 to i32
    %c0_i32_58 = arith.constant 0 : i32
    %258 = arith.cmpi ne, %257, %c0_i32_58 : i32
    scf.if %258 {
      %c0_59 = arith.constant 0 : index
      %c0_60 = arith.constant 0 : index
      %259 = vector.load %arg6[%c0_59, %c0_60] : memref<8x128xf32, #tpu.memory_space<vmem>>, vector<8x128xf32>
      tpu.vector_store %arg6[%c0_59, %c0_60], %254 {strides = array<i32>} : memref<8x128xf32, #tpu.memory_space<vmem>>, vector<8x128xf32>,
    } else {
    }
    return
  }
  func.func @transform_0(%arg0: i32) -> (i32, i32) {
    %c0_i32 = arith.constant 0 : i32
    %c0_i32_0 = arith.constant 0 : i32
    return %arg0, %c0_i32 : i32, i32
  }
  func.func @transform_1(%arg0: i32) -> (i32, i32) {
    %c0_i32 = arith.constant 0 : i32
    %c0_i32_0 = arith.constant 0 : i32
    %c0_i32_1 = arith.constant 0 : i32
    return %c0_i32, %c0_i32_0 : i32, i32
  }
  func.func @transform_2(%arg0: i32) -> (i32, i32) {
    %c0_i32 = arith.constant 0 : i32
    %c0_i32_0 = arith.constant 0 : i32
    %c0_i32_1 = arith.constant 0 : i32
    return %c0_i32, %c0_i32_0 : i32, i32
  }
  func.func @transform_3(%arg0: i32) -> (i32, i32) {
    %c0_i32 = arith.constant 0 : i32
    %c0_i32_0 = arith.constant 0 : i32
    %c0_i32_1 = arith.constant 0 : i32
    return %c0_i32, %c0_i32_0 : i32, i32
  }
  func.func @transform_4(%arg0: i32) -> (i32, i32) {
    %c0_i32 = arith.constant 0 : i32
    %c0_i32_0 = arith.constant 0 : i32
    %c0_i32_1 = arith.constant 0 : i32
    return %c0_i32, %c0_i32_0 : i32, i32
  }
  func.func @transform_5(%arg0: i32) -> (i32, i32) {
    %c0_i32 = arith.constant 0 : i32
    %c0_i32_0 = arith.constant 0 : i32
    %c0_i32_1 = arith.constant 0 : i32
    return %c0_i32, %c0_i32_0 : i32, i32
  }
}

</mosaic_0001>

<bundles_post_ra>
// kernel: encoder_forward.1
= control target key start
LH: loop header
LB: loop body
LE: loop exit
PB: predicated region body
PF: predicated region fallthrough
CT: control target
= control target key end

     0   :  { %v3753_v3 = vmov 0.0   ;;  %vm2389_vm0 = vmmov 0   ;;  %s3747_s1 = inlined_call_operand.vmem [shape: f32[128,384], index: 1, kind: input, shape index: {}]   ;;  %s3748_s0 = inlined_call_operand.vmem [shape: f32[64,128], index: 0, kind: input, shape index: {}]   ;;  %s3749_s2 = inlined_call_operand.vmem [shape: f32[128,384], index: 2, kind: input, shape index: {}]   ;;  %s3750_s3 = inlined_call_operand.vmem [shape: f32[1,384], index: 3, kind: input, shape index: {}]   ;;  %s3751_s4 = inlined_call_operand.vmem [shape: f32[1,128], index: 4, kind: input, shape index: {}]   ;;  %s3752_s5 = inlined_call_operand.vmem [shape: f32[8,128], index: 5, kind: output, shape index: {}]  }
   0x1   :  { %v79_v0 = vld [vmem:[%s3747_s1 + $0x170] sm:$0xff]  ;;  %v78_v1 = vld [vmem:[%s3747_s1 + $0x168] sm:$0xff]  ;;  %v76_v2 = vld [vmem:[%s3747_s1 + $0x158] sm:$0xff]  ;;  %162 = vmatprep.mubr.f32.mxu0 %v3753_v3 }
   0x2   :  { %98 = vmatprep.subr.mxu0 %v79_v0  ;;  %v75_v4 = vld [vmem:[%s3747_s1 + $0x150] sm:$0xff]  ;;  %v73_v5 = vld [vmem:[%s3747_s1 + $0x140] sm:$0xff]  ;;  %v72_v6 = vld [vmem:[%s3747_s1 + $0x138] sm:$0xff] }
   0x3   :  { %99 = vmatpush1.msra.mxu0 %v78_v1  ;;  %v70_v7 = vld [vmem:[%s3747_s1 + $0x128] sm:$0xff]  ;;  %v69_v8 = vld [vmem:[%s3747_s1 + $0x120] sm:$0xff]  ;;  %v67_v9 = vld [vmem:[%s3747_s1 + $0x110] sm:$0xff] }
   0x4   :  { %100 = vmatprep.subr.mxu0 %v76_v2  ;;  %v66_v10 = vld [vmem:[%s3747_s1 + $0x108] sm:$0xff]  ;;  %v64_v11 = vld [vmem:[%s3747_s1 + $0xf8] sm:$0xff]  ;;  %v63_v12 = vld [vmem:[%s3747_s1 + $0xf0] sm:$0xff] }
   0x5   :  { %101 = vmatpush1.msra.mxu0 %v75_v4  ;;  %v61_v13 = vld [vmem:[%s3747_s1 + $0xe0] sm:$0xff]  ;;  %v80_v14 = vld [vmem:[%s3747_s1 + $0x178] sm:$0xff]  ;;  %v58_v17 = vld [vmem:[%s3747_s1 + $0xc8] sm:$0xff] }
   0x6   :  { %102 = vmatprep.subr.mxu0 %v73_v5  ;;  %v60_v15 = vld [vmem:[%s3747_s1 + $0xd8] sm:$0xff]  ;;  %1933 = vmatprep.subr.mxu1 %v80_v14  ;;  %v77_v16 = vld [vmem:[%s3747_s1 + $0x160] sm:$0xff]  ;;  %v74_v18 = vld [vmem:[%s3747_s1 + $0x148] sm:$0xff] }
   0x7   :  { %103 = vmatpush1.msra.mxu0 %v72_v6  ;;  %1934 = vmatpush3.msra.mxu1 %v80_v14  ;;  %v57_v19 = vld [vmem:[%s3747_s1 + $0xc0] sm:$0xff]  ;;  %v55_v20 = vld [vmem:[%s3747_s1 + $0xb0] sm:$0xff]  ;;  %v54_v22 = vld [vmem:[%s3747_s1 + $0xa8] sm:$0xff] }
   0x8   :  { %104 = vmatprep.subr.mxu0 %v70_v7  ;;  %1935 = vmatprep.subr.mxu1 %v77_v16  ;;  %v71_v21 = vld [vmem:[%s3747_s1 + $0x130] sm:$0xff]  ;;  %v52_v23 = vld [vmem:[%s3747_s1 + $0x98] sm:$0xff]  ;;  %v49_v26 = vld [vmem:[%s3747_s1 + $0x80] sm:$0xff] }
   0x9   :  { %105 = vmatpush1.msra.mxu0 %v69_v8  ;;  %1936 = vmatpush3.msra.mxu1 %v77_v16  ;;  %v68_v24 = vld [vmem:[%s3747_s1 + $0x118] sm:$0xff]  ;;  %v51_v25 = vld [vmem:[%s3747_s1 + $0x90] sm:$0xff]  ;;  %v65_v27 = vld [vmem:[%s3747_s1 + $0x100] sm:$0xff] }
   0xa   :  { %106 = vmatprep.subr.mxu0 %v67_v9  ;;  %1937 = vmatprep.subr.mxu1 %v74_v18  ;;  %v48_v28 = vld [vmem:[%s3747_s1 + $0x78] sm:$0xff]  ;;  %v46_v29 = vld [vmem:[%s3747_s1 + $0x68] sm:$0xff]  ;;  %v45_v31 = vld [vmem:[%s3747_s1 + $0x60] sm:$0xff] }
   0xb   :  { %107 = vmatpush1.msra.mxu0 %v66_v10  ;;  %1938 = vmatpush3.msra.mxu1 %v74_v18  ;;  %v62_v30 = vld [vmem:[%s3747_s1 + $0xe8] sm:$0xff]  ;;  %v43_v32 = vld [vmem:[%s3747_s1 + $0x50] sm:$0xff]  ;;  %v40_v35 = vld [vmem:[%s3747_s1 + $0x38] sm:$0xff] }
   0xc   :  { %108 = vmatprep.subr.mxu0 %v64_v11  ;;  %1939 = vmatprep.subr.mxu1 %v71_v21  ;;  %v59_v33 = vld [vmem:[%s3747_s1 + $0xd0] sm:$0xff]  ;;  %v42_v34 = vld [vmem:[%s3747_s1 + $0x48] sm:$0xff]  ;;  %v56_v36 = vld [vmem:[%s3747_s1 + $0xb8] sm:$0xff] }
   0xd   :  { %109 = vmatpush1.msra.mxu0 %v63_v12  ;;  %1940 = vmatpush3.msra.mxu1 %v71_v21  ;;  %v39_v37 = vld [vmem:[%s3747_s1 + $0x30] sm:$0xff]  ;;  %v37_v38 = vld [vmem:[%s3747_s1 + $0x20] sm:$0xff]  ;;  %v36_v40 = vld [vmem:[%s3747_s1 + $0x18] sm:$0xff] }
   0xe   :  { %110 = vmatprep.subr.mxu0 %v61_v13  ;;  %1941 = vmatprep.subr.mxu1 %v68_v24  ;;  %v53_v39 = vld [vmem:[%s3747_s1 + $0xa0] sm:$0xff]  ;;  %v34_v41 = vld [vmem:[%s3747_s1 + $0x8] sm:$0xff]  ;;  %v2558_v45 = vld [vmem:[%s3749_s2 + $0x170] sm:$0xff] }
   0xf   :  { %111 = vmatpush1.msra.mxu0 %v60_v15  ;;  %1942 = vmatpush3.msra.mxu1 %v68_v24  ;;  %v50_v42 = vld [vmem:[%s3747_s1 + $0x88] sm:$0xff]  ;;  %v33_v43 = vld [vmem:[%s3747_s1] sm:$0xff]  ;;  %3772 = vst [vmem:[#allocation4_spill] sm:$0xff] %v2558_v45  ;;  %v2568_v47 = vld [vmem:[%s3749_s2 + $0x158] sm:$0xff] }
  0x10   :  { %112 = vmatprep.subr.mxu0 %v58_v17  ;;  %1943 = vmatprep.subr.mxu1 %v65_v27  ;;  %v2553_v44 = vld [vmem:[%s3748_s0] sm:$0xff]  ;;  %v2563_v46 = vld [vmem:[%s3749_s2 + $0x168] sm:$0xff]  ;;  %v47_v48 = vld [vmem:[%s3747_s1 + $0x70] sm:$0xff] }
  0x11   :  { %113 = vmatpush1.msra.mxu0 %v57_v19  ;;  %1944 = vmatpush3.msra.mxu1 %v65_v27  ;;  %v2578_v49 = vld [vmem:[%s3749_s2 + $0x150] sm:$0xff]  ;;  %v2585_v50 = vld [vmem:[%s3748_s0 + $0x8] sm:$0xff]  ;;  %v2590_v51 = vld [vmem:[%s3749_s2 + $0x140] sm:$0xff] }
  0x12   :  { %114 = vmatprep.subr.mxu0 %v55_v20  ;;  %1945 = vmatprep.subr.mxu1 %v62_v30  ;;  %v2596_v52 = vld [vmem:[%s3749_s2 + $0x138] sm:$0xff]  ;;  %v2602_v53 = vld [vmem:[%s3749_s2 + $0x128] sm:$0xff]  ;;  %v2612_v55 = vld [vmem:[%s3749_s2 + $0x120] sm:$0xff] }
  0x13   :  { %115 = vmatpush1.msra.mxu0 %v54_v22  ;;  %1946 = vmatpush3.msra.mxu1 %v62_v30  ;;  %v44_v54 = vld [vmem:[%s3747_s1 + $0x58] sm:$0xff]  ;;  %v2619_v56 = vld [vmem:[%s3748_s0 + $0x10] sm:$0xff]  ;;  %v2630_v58 = vld [vmem:[%s3749_s2 + $0x108] sm:$0xff] }
  0x14   :  { %116 = vmatprep.subr.mxu0 %v52_v23  ;;  %1947 = vmatprep.subr.mxu1 %v59_v33  ;;  %v2624_v57 = vld [vmem:[%s3749_s2 + $0x110] sm:$0xff]  ;;  %v2636_v59 = vld [vmem:[%s3749_s2 + $0xf8] sm:$0xff]  ;;  %v41_v60 = vld [vmem:[%s3747_s1 + $0x40] sm:$0xff] }
  0x15   :  { %117 = vmatpush1.msra.mxu0 %v51_v25  ;;  %1948 = vmatpush3.msra.mxu1 %v59_v33  ;;  %v2646_v61 = vld [vmem:[%s3749_s2 + $0xf0] sm:$0xff]  ;;  %v2653_v62 = vld [vmem:[%s3748_s0 + $0x18] sm:$0xff]  ;;  %v2658_v63 = vld [vmem:[%s3749_s2 + $0xe0] sm:$0xff] }
  0x16   :  { %118 = vmatprep.subr.mxu0 %v49_v26  ;;  %1949 = vmatprep.subr.mxu1 %v56_v36  ;;  %v2664_v0 = vld [vmem:[%s3749_s2 + $0xd8] sm:$0xff]  ;;  %v2670_v1 = vld [vmem:[%s3749_s2 + $0xc8] sm:$0xff]  ;;  %v2680_v4 = vld [vmem:[%s3749_s2 + $0xc0] sm:$0xff] }
  0x17   :  { %119 = vmatpush1.msra.mxu0 %v48_v28  ;;  %1950 = vmatpush3.msra.mxu1 %v56_v36  ;;  %v38_v2 = vld [vmem:[%s3747_s1 + $0x28] sm:$0xff]  ;;  %v2687_v5 = vld [vmem:[%s3748_s0 + $0x20] sm:$0xff]  ;;  %v2692_v6 = vld [vmem:[%s3749_s2 + $0xb0] sm:$0xff] }
  0x18   :  { %120 = vmatprep.subr.mxu0 %v46_v29  ;;  %1951 = vmatprep.subr.mxu1 %v53_v39  ;;  %v2698_v7 = vld [vmem:[%s3749_s2 + $0xa8] sm:$0xff]  ;;  %v2704_v8 = vld [vmem:[%s3749_s2 + $0x98] sm:$0xff]  ;;  %v35_v9 = vld [vmem:[%s3747_s1 + $0x10] sm:$0xff] }
  0x19   :  { %121 = vmatpush1.msra.mxu0 %v45_v31  ;;  %1952 = vmatpush3.msra.mxu1 %v53_v39  ;;  %v2714_v10 = vld [vmem:[%s3749_s2 + $0x90] sm:$0xff]  ;;  %v30_v11 = vld [vmem:[%s3748_s0 + $0x28] sm:$0xff]  ;;  %v2724_v12 = vld [vmem:[%s3749_s2 + $0x80] sm:$0xff] }
  0x1a   :  { %122 = vmatprep.subr.mxu0 %v43_v32  ;;  %1953 = vmatprep.subr.mxu1 %v50_v42  ;;  %v2730_v13 = vld [vmem:[%s3749_s2 + $0x78] sm:$0xff]  ;;  %v2736_v14 = vld [vmem:[%s3749_s2 + $0x68] sm:$0xff]  ;;  %v2742_v15 = vld [vmem:[%s3749_s2 + $0x60] sm:$0xff] }
  0x1b   :  { %123 = vmatpush1.msra.mxu0 %v42_v34  ;;  %1954 = vmatpush3.msra.mxu1 %v50_v42  ;;  %v31_v16 = vld [vmem:[%s3748_s0 + $0x30] sm:$0xff]  ;;  %v2758_v18 = vld [vmem:[%s3749_s2 + $0x48] sm:$0xff]  ;;  %v2765_v19 = vld [vmem:[%s3749_s2 + $0x38] sm:$0xff]  ;;  %v83_v42 = vlaneseq }
  0x1c   :  { %124 = vmatprep.subr.mxu0 %v40_v35  ;;  %1955 = vmatprep.subr.mxu1 %v47_v48  ;;  %v2752_v17 = vld [vmem:[%s3749_s2 + $0x50] sm:$0xff]  ;;  %v2777_v21 = vld [vmem:[%s3749_s2 + $0x178] sm:$0xff]  ;;  %v2787_v23 = vld [vmem:[%s3749_s2 + $0x20] sm:$0xff] }
  0x1d   :  { %125 = vmatpush1.msra.mxu0 %v39_v37  ;;  %1956 = vmatpush3.msra.mxu1 %v47_v48  ;;  %v2772_v20 = vld [vmem:[%s3749_s2 + $0x30] sm:$0xff]  ;;  %v32_v22 = vld [vmem:[%s3748_s0 + $0x38] sm:$0xff]  ;;  %v2800_v25 = vld [vmem:[%s3749_s2 + $0x8] sm:$0xff] }
  0x1e   :  { %126 = vmatprep.subr.mxu0 %v37_v38  ;;  %1957 = vmatprep.subr.mxu1 %v44_v54  ;;  %v2793_v24 = vld [vmem:[%s3749_s2 + $0x18] sm:$0xff]  ;;  %3774 = vst [vmem:[#allocation6_spill] sm:$0xff] %v2800_v25  ;;  %v2807_v26 = vld [vmem:[%s3749_s2] sm:$0xff]  ;;  %v2821_v28 = vld [vmem:[%s3749_s2 + $0x148] sm:$0xff] }
  0x1f   :  { %127 = vmatpush1.msra.mxu0 %v36_v40  ;;  %1958 = vmatpush3.msra.mxu1 %v44_v54  ;;  %3773 = vst [vmem:[#allocation5_spill] sm:$0xff] %v2793_v24  ;;  %3775 = vst [vmem:[#allocation7_spill] sm:$0xff] %v2807_v26  ;;  %v2812_v27 = vld [vmem:[%s3749_s2 + $0x160] sm:$0xff]  ;;  %v2830_v29 = vld [vmem:[%s3749_s2 + $0x130] sm:$0xff] }
  0x20   :  { %128 = vmatprep.subr.mxu0 %v34_v41  ;;  %1959 = vmatprep.subr.mxu1 %v41_v60  ;;  %v2838_v30 = vld [vmem:[%s3749_s2 + $0x118] sm:$0xff]  ;;  %v2847_v31 = vld [vmem:[%s3749_s2 + $0x100] sm:$0xff]  ;;  %v2856_v32 = vld [vmem:[%s3749_s2 + $0xe8] sm:$0xff] }
  0x21   :  { %129 = vmatpush1.msra.mxu0 %v33_v43  ;;  %1960 = vmatpush3.msra.mxu1 %v41_v60  ;;  %v2863_v33 = vld [vmem:[%s3749_s2 + $0xd0] sm:$0xff]  ;;  %v2872_v34 = vld [vmem:[%s3749_s2 + $0xb8] sm:$0xff]  ;;  %v2881_v35 = vld [vmem:[%s3749_s2 + $0xa0] sm:$0xff]  ;;  %v84_v43 = vshrl.u32 %v83_v42, 7 }
  0x22   :  { %163 = vmatmul.mubr.f32.vlgmr.msra.gmra.mxu0 %v2553_v44  ;;  %402 = vmatprep.subr.mxu0 %v2558_v45  ;;  %v2890_v36 = vld [vmem:[%s3749_s2 + $0x88] sm:$0xff]  ;;  %v2899_v37 = vld [vmem:[%s3749_s2 + $0x70] sm:$0xff]  ;;  %v2908_v38 = vld [vmem:[%s3749_s2 + $0x58] sm:$0xff] }
  0x23   :  { %403 = vmatpush1.msra.mxu0 %v2563_v46  ;;  %168 = vmatprep.mubr.f32.mxu0 %v3753_v3  ;;  %v2917_v39 = vld [vmem:[%s3749_s2 + $0x40] sm:$0xff]  ;;  %v2926_v40 = vld [vmem:[%s3749_s2 + $0x28] sm:$0xff]  ;;  %v2935_v41 = vld [vmem:[%s3749_s2 + $0x10] sm:$0xff]  ;;  %v89_v54 = vsub.s32 1, %v84_v43 }
  0x24   :  { %404 = vmatprep.subr.mxu0 %v2568_v47  ;;  %1961 = vmatprep.subr.mxu1 %v38_v2  ;;  %3776 = vst [vmem:[#allocation8_spill] sm:$0xff] %v2926_v40  ;;  %3777 = vst [vmem:[#allocation9_spill] sm:$0xff] %v2935_v41  ;;  %v81_v48 = vld [vmem:[%s3750_s3] sm:$0x7] }
  0x25   :  { %405 = vmatpush1.msra.mxu0 %v2578_v49  ;;  %1962 = vmatpush3.msra.mxu1 %v38_v2  ;;  %v90_v2 = vrot.slane %v81_v48, %v89_v54 }
  0x26   :  { %169 = vmatmul.mubr.f32.gmra.mxu0 %v2585_v50  ;;  %406 = vmatprep.subr.mxu0 %v2590_v51 }
  0x27   :  { %407 = vmatpush1.msra.mxu0 %v2596_v52  ;;  %174 = vmatprep.mubr.f32.mxu0 %v3753_v3 }
  0x28   :  { %408 = vmatprep.subr.mxu0 %v2602_v53  ;;  %1963 = vmatprep.subr.mxu1 %v35_v9 }
  0x29   :  { %409 = vmatpush1.msra.mxu0 %v2612_v55  ;;  %1964 = vmatpush3.msra.mxu1 %v35_v9 }
  0x2a   :  { %175 = vmatmul.mubr.f32.gmra.mxu0 %v2619_v56  ;;  %410 = vmatprep.subr.mxu0 %v2624_v57 }
  0x2b   :  { %411 = vmatpush1.msra.mxu0 %v2630_v58  ;;  %180 = vmatprep.mubr.f32.mxu0 %v3753_v3 }
  0x2c   :  { %412 = vmatprep.subr.mxu0 %v2636_v59  ;;  %1965 = vmatprep.mubr.f32.mxu1 %v2553_v44  ;;  %v85_v44 = vsub.s32 0, %v84_v43 }
  0x2d   :  { %413 = vmatpush1.msra.mxu0 %v2646_v61  ;;  %1977 = vmatprep.subr.mxu1 %v3753_v3 }
  0x2e   :  { %181 = vmatmul.mubr.f32.gmra.mxu0 %v2653_v62  ;;  %414 = vmatprep.subr.mxu0 %v2658_v63  ;;  %v86_v60 = vrot.slane %v81_v48, %v85_v44 }
  0x2f   :  { %415 = vmatpush1.msra.mxu0 %v2664_v0  ;;  %186 = vmatprep.mubr.f32.mxu0 %v3753_v3 }
  0x30   :  { %416 = vmatprep.subr.mxu0 %v2670_v1  ;;  %1966 = vmatmul.mubr.f32.vlgmr.msra.gmra.mxu1 %v2585_v50 }
  0x31   :  { %417 = vmatpush1.msra.mxu0 %v2680_v4  ;;  %1978 = vmatpush3.msra.mxu1 %v2777_v21 }
  0x32   :  { %187 = vmatmul.mubr.f32.gmra.mxu0 %v2687_v5  ;;  %418 = vmatprep.subr.mxu0 %v2692_v6 }
  0x33   :  { %419 = vmatpush1.msra.mxu0 %v2698_v7  ;;  %192 = vmatprep.mubr.f32.mxu0 %v3753_v3 }
  0x34   :  { %420 = vmatprep.subr.mxu0 %v2704_v8  ;;  %1979 = vmatprep.subr.mxu1 %v3753_v3 }
  0x35   :  { %421 = vmatpush1.msra.mxu0 %v2714_v10  ;;  %1980 = vmatpush3.msra.mxu1 %v2812_v27 }
  0x36   :  { %193 = vmatmul.mubr.f32.gmra.mxu0 %v30_v11  ;;  %422 = vmatprep.subr.mxu0 %v2724_v12 }
  0x37   :  { %423 = vmatpush1.msra.mxu0 %v2730_v13  ;;  %198 = vmatprep.mubr.f32.mxu0 %v3753_v3 }
  0x38   :  { %424 = vmatprep.subr.mxu0 %v2736_v14  ;;  %1981 = vmatprep.subr.mxu1 %v3753_v3 }
  0x39   :  { %425 = vmatpush1.msra.mxu0 %v2742_v15  ;;  %1982 = vmatpush3.msra.mxu1 %v2821_v28 }
  0x3a   :  { %199 = vmatmul.mubr.f32.gmra.mxu0 %v31_v16  ;;  %426 = vmatprep.subr.mxu0 %v2752_v17 }
  0x3b   :  { %427 = vmatpush1.msra.mxu0 %v2758_v18  ;;  %204 = vmatprep.mubr.f32.mxu0 %v3753_v3 }
  0x3c   :  { %428 = vmatprep.subr.mxu0 %v2765_v19  ;;  %1968 = vmatprep.mubr.f32.mxu1 %v2619_v56 }
  0x3d   :  { %429 = vmatpush1.msra.mxu0 %v2772_v20  ;;  %1983 = vmatprep.subr.mxu1 %v3753_v3 }
  0x3e   :  { %205 = vmatmul.mubr.f32.gmra.mxu0 %v32_v22  ;;  %430 = vmatprep.subr.mxu0 %v2787_v23 }
  0x3f   :  { %431 = vmatpush1.msra.mxu0 %v2793_v24  ;;  %466 = vmatprep.mubr.f32.mxu0 %v3753_v3 }
  0x40   :  { %432 = vmatprep.subr.mxu0 %v2800_v25  ;;  %1969 = vmatmul.mubr.f32.gmra.mxu1 %v2653_v62 }
  0x41   :  { %433 = vmatpush1.msra.mxu0 %v2807_v26  ;;  %1984 = vmatpush3.msra.mxu1 %v2830_v29 }
  0x42   :  { %467 = vmatmul.mubr.f32.vlgmr.msra.gmra.mxu0 %v3753_v3  ;;  %1971 = vmatprep.mubr.f32.mxu1 %v2687_v5 }
  0x43   :  { %1985 = vmatprep.subr.mxu1 %v3753_v3  ;;  %570 = vmatprep.subr.mxu0 %v2558_v45 }
  0x44   :  { %1986 = vmatpush3.msra.mxu1 %v2838_v30  ;;  %571 = vmatpush1.msra.mxu0 %v2563_v46 }
  0x45   :  { %1987 = vmatprep.subr.mxu1 %v3753_v3  ;;  %1972 = vmatmul.mubr.f32.gmra.mxu1 %v30_v11 }
  0x46   :  { %1988 = vmatpush3.msra.mxu1 %v2847_v31  ;;  %1974 = vmatprep.mubr.f32.mxu1 %v31_v16 }
  0x47   :  { %1989 = vmatprep.subr.mxu1 %v3753_v3  ;;  %572 = vmatprep.subr.mxu0 %v2568_v47 }
  0x48   :  { %1990 = vmatpush3.msra.mxu1 %v2856_v32  ;;  %573 = vmatpush1.msra.mxu0 %v2578_v49 }
  0x49   :  { %1991 = vmatprep.subr.mxu1 %v3753_v3  ;;  %1975 = vmatmul.mubr.f32.gmra.mxu1 %v32_v22 }
  0x4a   :  { %1992 = vmatpush3.msra.mxu1 %v2863_v33  ;;  %2009 = vmatprep.mubr.msk.f32.mxu1 %vm2389_vm0, %v3753_v3 }
  0x4b   :  { %1993 = vmatprep.subr.mxu1 %v3753_v3  ;;  %574 = vmatprep.subr.mxu0 %v2590_v51 }
  0x4c   :  { %1994 = vmatpush3.msra.mxu1 %v2872_v34  ;;  %575 = vmatpush1.msra.mxu0 %v2596_v52 }
  0x4d   :  { %1995 = vmatprep.subr.mxu1 %v3753_v3  ;;  %576 = vmatprep.subr.mxu0 %v2602_v53 }
  0x4e   :  { %1996 = vmatpush3.msra.mxu1 %v2881_v35  ;;  %577 = vmatpush1.msra.mxu0 %v2612_v55 }
  0x4f   :  { %1997 = vmatprep.subr.mxu1 %v3753_v3  ;;  %578 = vmatprep.subr.mxu0 %v2624_v57 }
  0x50   :  { %1998 = vmatpush3.msra.mxu1 %v2890_v36  ;;  %579 = vmatpush1.msra.mxu0 %v2630_v58 }
  0x51   :  { %1999 = vmatprep.subr.mxu1 %v3753_v3  ;;  %580 = vmatprep.subr.mxu0 %v2636_v59 }
  0x52   :  { %2000 = vmatpush3.msra.mxu1 %v2899_v37  ;;  %581 = vmatpush1.msra.mxu0 %v2646_v61 }
  0x53   :  { %2001 = vmatprep.subr.mxu1 %v3753_v3  ;;  %582 = vmatprep.subr.mxu0 %v2658_v63 }
  0x54   :  { %2002 = vmatpush3.msra.mxu1 %v2908_v38  ;;  %583 = vmatpush1.msra.mxu0 %v2664_v0 }
  0x55   :  { %2003 = vmatprep.subr.mxu1 %v3753_v3  ;;  %584 = vmatprep.subr.mxu0 %v2670_v1 }
  0x56   :  { %2004 = vmatpush3.msra.mxu1 %v2917_v39  ;;  %585 = vmatpush1.msra.mxu0 %v2680_v4 }
  0x57   :  { %2005 = vmatprep.subr.mxu1 %v3753_v3  ;;  %586 = vmatprep.subr.mxu0 %v2692_v6 }
  0x58   :  { %2006 = vmatpush3.msra.mxu1 %v2926_v40  ;;  %587 = vmatpush1.msra.mxu0 %v2698_v7 }
  0x59   :  { %2007 = vmatprep.subr.mxu1 %v3753_v3  ;;  %588 = vmatprep.subr.mxu0 %v2704_v8 }
  0x5a   :  { %2008 = vmatpush3.msra.mxu1 %v2935_v41  ;;  %589 = vmatpush1.msra.mxu0 %v2714_v10 }
  0x5b   :  { %2010 = vmatmul.mubr.f32.vlgmr.msra.gmra.mxu1 %v3753_v3  ;;  %2012 = vmatprep.subr.mxu1 %v3753_v3 }
  0x5c   :  { %2013 = vmatpush3.msra.mxu1 %v2777_v21  ;;  %590 = vmatprep.subr.mxu0 %v2724_v12 }
  0x5d   :  { %2014 = vmatprep.subr.mxu1 %v3753_v3  ;;  %591 = vmatpush1.msra.mxu0 %v2730_v13 }
  0x5e   :  { %2015 = vmatpush3.msra.mxu1 %v2812_v27  ;;  %592 = vmatprep.subr.mxu0 %v2736_v14 }
  0x5f   :  { %2016 = vmatprep.subr.mxu1 %v3753_v3  ;;  %593 = vmatpush1.msra.mxu0 %v2742_v15 }
  0x60   :  { %2017 = vmatpush3.msra.mxu1 %v2821_v28  ;;  %594 = vmatprep.subr.mxu0 %v2752_v17 }
  0x61   :  { %2018 = vmatprep.subr.mxu1 %v3753_v3  ;;  %595 = vmatpush1.msra.mxu0 %v2758_v18 }
  0x62   :  { %2019 = vmatpush3.msra.mxu1 %v2830_v29  ;;  %596 = vmatprep.subr.mxu0 %v2765_v19 }
  0x63   :  { %2020 = vmatprep.subr.mxu1 %v3753_v3  ;;  %597 = vmatpush1.msra.mxu0 %v2772_v20 }
  0x64   :  { %2021 = vmatpush3.msra.mxu1 %v2838_v30  ;;  %598 = vmatprep.subr.mxu0 %v2787_v23 }
  0x65   :  { %2022 = vmatprep.subr.mxu1 %v3753_v3  ;;  %599 = vmatpush1.msra.mxu0 %v2793_v24 }
  0x66   :  { %2023 = vmatpush3.msra.mxu1 %v2847_v31  ;;  %600 = vmatprep.subr.mxu0 %v2800_v25 }
  0x67   :  { %2024 = vmatprep.subr.mxu1 %v3753_v3  ;;  %601 = vmatpush1.msra.mxu0 %v2807_v26 }
  0x68   :  { %2025 = vmatpush3.msra.mxu1 %v2856_v32  ;;  %634 = vmatprep.mubr.f32.mxu0 %v3753_v3 }
  0x69   :  { %2026 = vmatprep.subr.mxu1 %v3753_v3  ;;  %2044 = vmatprep.mubr.msk.f32.mxu1 %vm2389_vm0, %v3753_v3 }
  0x6a   :  { %2027 = vmatpush3.msra.mxu1 %v2863_v33  ;;  %738 = vmatprep.subr.mxu0 %v2558_v45 }
  0x6b   :  { %2028 = vmatprep.subr.mxu1 %v3753_v3 }
  0x6c   :  { %2029 = vmatpush3.msra.mxu1 %v2872_v34 }
  0x6d   :  { %2030 = vmatprep.subr.mxu1 %v3753_v3 }
  0x6e   :  { %2031 = vmatpush3.msra.mxu1 %v2881_v35 }
  0x6f   :  { %2032 = vmatprep.subr.mxu1 %v3753_v3 }
  0x70   :  { %2033 = vmatpush3.msra.mxu1 %v2890_v36 }
  0x71   :  { %2034 = vmatprep.subr.mxu1 %v3753_v3 }
  0x72   :  { %2035 = vmatpush3.msra.mxu1 %v2899_v37 }
  0x73   :  { %2036 = vmatprep.subr.mxu1 %v3753_v3 }
  0x74   :  { %2037 = vmatpush3.msra.mxu1 %v2908_v38 }
  0x75   :  { %2038 = vmatprep.subr.mxu1 %v3753_v3 }
  0x76   :  { %2039 = vmatpush3.msra.mxu1 %v2917_v39 }
  0x77   :  { %2040 = vmatprep.subr.mxu1 %v3753_v3 }
  0x78   :  { %2041 = vmatpush3.msra.mxu1 %v2926_v40 }
  0x79   :  { %2042 = vmatprep.subr.mxu1 %v3753_v3 }
  0x7a   :  { %2043 = vmatpush3.msra.mxu1 %v2935_v41 }
  0x7b   :  { %2047 = vmatprep.subr.mxu1 %v3753_v3 }
  0xe2   :  { %v164_v50 = vpop.f32.mrf.mxu0 }
  0xe4   :  { %v166_v56 = vpop.f32.mrf.mxu0 }
  0xe6   :  { %v170_v62 = vpop.f32.mrf.mxu0 }
  0xe7   :  { %v2997_v5 = vadd.f32 %v170_v62, %v86_v60 }
  0xe8   :  { %v172_v9 = vpop.f32.mrf.mxu0 }
  0xe9   :  { %3778 = vst [vmem:[#allocation10_spill] sm:$0xff] %v2997_v5  ;;  %v2999_v11 = vadd.f32 %v172_v9, %v90_v2  ;;  %v93_v9 = vsub.s32 2, %v84_v43 }
  0xea   :  { %v176_v16 = vpop.f32.mrf.mxu0 }
  0xeb   :  { %3779 = vst [vmem:[#allocation11_spill] sm:$0xff] %v2999_v11  ;;  %v3001_v22 = vadd.f32 %v176_v16, %v86_v60 }
  0xec   :  { %v178_v42 = vpop.f32.mrf.mxu0 }
  0xed   :  { %3780 = vst [vmem:[#allocation12_spill] sm:$0xff] %v3001_v22  ;;  %v3003_v3 = vadd.f32 %v178_v42, %v90_v2  ;;  %v94_v42 = vrot.slane %v81_v48, %v93_v9 }
  0xee   :  { %v182_v45 = vpop.f32.mrf.mxu0 }
  0xef   :  { %3781 = vst [vmem:[#allocation13_spill] sm:$0xff] %v3003_v3  ;;  %v3005_v41 = vadd.f32 %v182_v45, %v86_v60 }
  0xf0   :  { %v184_v26 = vpop.f32.mrf.mxu0 }
  0xf1   :  { %3782 = vst [vmem:[#allocation14_spill] sm:$0xff] %v3005_v41  ;;  %v3007_v25 = vadd.f32 %v184_v26, %v90_v2  ;;  %v1967_v26 = vpop.f32.mrf.mxu1 }
  0xf2   :  { %v188_v44 = vpop.f32.mrf.mxu0 }
  0xf3   :  { %3783 = vst [vmem:[#allocation15_spill] sm:$0xff] %v3007_v25  ;;  %v3009_v40 = vadd.f32 %v188_v44, %v86_v60  ;;  %v3021_v44 = vadd.f32 %v1967_v26, %v94_v42 }
  0xf4   :  { %v190_v54 = vpop.f32.mrf.mxu0 }
  0xf5   :  { %3784 = vst [vmem:[#allocation16_spill] sm:$0xff] %v3009_v40  ;;  %v3011_v62 = vadd.f32 %v190_v54, %v90_v2  ;;  %3790 = vst [vmem:[#allocation22_spill] sm:$0xff] %v3021_v44 }
  0xf6   :  { %v194_v11 = vpop.f32.mrf.mxu0 }
  0xf7   :  { %3785 = vst [vmem:[#allocation17_spill] sm:$0xff] %v3011_v62  ;;  %v3013_v5 = vadd.f32 %v194_v11, %v86_v60  ;;  %v165_v62 = vadd.f32 %v164_v50, %v86_v60  ;;  %v167_v50 = vadd.f32 %v166_v56, %v90_v2 }
  0xf8   :  { %v196_v16 = vpop.f32.mrf.mxu0 }
  0xf9   :  { %3786 = vst [vmem:[#allocation18_spill] sm:$0xff] %v3013_v5  ;;  %v3015_v22 = vadd.f32 %v196_v16, %v90_v2  ;;  %v277_v16 = vpop.f32.mrf.mxu1 }
  0xfa   :  { %v200_v3 = vpop.f32.mrf.mxu0 }
  0xfb   :  { %3787 = vst [vmem:[#allocation19_spill] sm:$0xff] %v3015_v22  ;;  %v3017_v45 = vadd.f32 %v200_v3, %v86_v60 }
  0xfc   :  { %v202_v41 = vpop.f32.mrf.mxu0 }
  0xfd   :  { %3788 = vst [vmem:[#allocation20_spill] sm:$0xff] %v3017_v45  ;;  %v3019_v25 = vadd.f32 %v202_v41, %v90_v2 }
  0xfe   :  { %v206_v40 = vpop.f32.mrf.mxu0 }
  0xff   :  { %3789 = vst [vmem:[#allocation21_spill] sm:$0xff] %v3019_v25  ;;  %v3023_v54 = vadd.f32 %v206_v40, %v86_v60 }
 0x100   :  { %v208_v43 = vpop.f32.mrf.mxu0  ;;  %v1970_v48 = vpop.f32.mrf.mxu1 }
 0x101   :  { %3791 = vst [vmem:[#allocation23_spill] sm:$0xff] %v3023_v54  ;;  %v3025_v11 = vadd.f32 %v208_v43, %v90_v2  ;;  %v3027_v3 = vadd.f32 %v1970_v48, %v94_v42 }
 0x102   :  { %v468_v5 = vpop.f32.mrf.mxu0  ;;  %v287_v45 = vpop.f32.mrf.mxu1 }
 0x103   :  { %3792 = vst [vmem:[#allocation24_spill] sm:$0xff] %v3025_v11  ;;  %v543_v22 = vadd.f32 %v468_v5, %v165_v62  ;;  %3793 = vst [vmem:[#allocation25_spill] sm:$0xff] %v3027_v3  ;;  %v3029_v41 = vadd.f32 %v287_v45, %v94_v42  ;;  %v3042_v45 = vld [vmem:[%s3751_s4] ss:$0 sm:$0xff] }
 0x104   :  { %v470_v54 = vpop.f32.mrf.mxu0 }
 0x105   :  { %v1757_v9 = vmul.f32 -1.442695, %v543_v22  ;;  %3794 = vst [vmem:[#allocation26_spill] sm:$0xff] %v3029_v41  ;;  %v1973_v26 = vpop.f32.mrf.mxu1  ;;  %v550_v5 = vadd.f32 %v470_v54, %v167_v50  ;;  %v278_v54 = vadd.f32 %v277_v16, %v94_v42  ;;  %v3800_v16 = vld [vmem:[#allocation8_spill] sm:$0xff] }
 0x106   :  { %v3031_v25 = vadd.f32 %v1973_v26, %v94_v42 }
 0x107   :  { %2259 = vpow2.f32 %v1757_v9  ;;  %v297_v40 = vpop.f32.mrf.mxu1  ;;  %v1758_v48 = vmul.f32 -1.442695, %v550_v5 }
 0x108   :  { %3795 = vst [vmem:[#allocation27_spill] sm:$0xff] %v3031_v25  ;;  %v3033_v44 = vadd.f32 %v297_v40, %v94_v42 }
 0x109   :  { %v1976_v60 = vpop.f32.mrf.mxu1  ;;  %2261 = vpow2.f32 %v1758_v48 }
 0x10a   :  { %3796 = vst [vmem:[#allocation28_spill] sm:$0xff] %v3033_v44  ;;  %v3035_v43 = vadd.f32 %v1976_v60, %v94_v42 }
 0x10b   :  { %v307_v62 = vpop.f32.mrf.mxu1 }
 0x10c   :  { %3797 = vst [vmem:[#allocation29_spill] sm:$0xff] %v3035_v43  ;;  %v3037_v22 = vadd.f32 %v307_v62, %v94_v42  ;;  %v3799_v42 = vmov 0.0  }
 0x10e   :  { %3798 = vst [vmem:[#allocation30_spill] sm:$0xff] %v3037_v22 }
 0x114   :  { %v2260_v11 = vpop.eup %2259 }
 0x115   :  { %v547_v9 = vadd.f32 1.0, %v2260_v11 }
 0x116   :  { %v2262_v2 = vpop.eup %2261 }
 0x117   :  { %2263 = vrcp.f32 %v547_v9  ;;  %v554_v62 = vadd.f32 1.0, %v2262_v2 }
 0x11b   :  { %v539_v26 = vpop.f32.mrf.mxu1 }
 0x11c   :  { %v557_v56 = vadd.f32 %v3042_v45, %v539_v26  ;;  %v3802_v26 = vld [vmem:[#allocation7_spill] sm:$0xff] }
 0x11d   :  { %v2011_v40 = vpop.f32.mrf.mxu1 }
 0x11e   :  { %v3803_v40 = vld [vmem:[#allocation9_spill] sm:$0xff] }
 0x124   :  { %v2264_v60 = vpop.eup %2263 }
 0x125   :  { %v558_v50 = vmul.f32 %v2264_v60, %v557_v56  ;;  %v3804_v56 = vld [vmem:[#allocation4_spill] sm:$0xff] }
 0x127   :  { %v559_v43 = vadd.f32 %v558_v50, %v278_v54  ;;  %v3805_v54 = vld [vmem:[#allocation10_spill] sm:$0xff] }
 0x129   :  { %2265 = vtanh.f32 %v559_v43  ;;  %v3801_v43 = vld [vmem:[#allocation6_spill] sm:$0xff] }
 0x12a   :  { %2267 = vrcp.f32 %v554_v62 }
 0x136   :  { %v2266_v11 = vpop.eup %2265 }
 0x137   :  { %v561_v5 = vsub.f32 0.0, %v2266_v11  ;;  %v2268_v48 = vpop.eup %2267 }
 0x139   :  { %v562_v9 = vmul.f32 %v2268_v48, %v561_v5  ;;  %v3806_v48 = vld [vmem:[#allocation11_spill] sm:$0xff] }
 0x13b   :  { %v3045_v22 = vadd.f32 %v2266_v11, %v562_v9 }
 0x13d   :  { %635 = vmatmul.mubr.f32.vlgmr.msra.gmra.mxu0 %v3045_v22  ;;  %2045 = vmatmul.mubr.f32.vlgmr.msra.gmra.mxu1 %v3045_v22 }
 0x13e   :  { %739 = vmatpush1.msra.mxu0 %v2563_v46  ;;  %2048 = vmatpush3.msra.mxu1 %v2777_v21 }
 0x13f   :  { %740 = vmatprep.subr.mxu0 %v2568_v47  ;;  %2049 = vmatprep.subr.mxu1 %v3799_v42 }
 0x140   :  { %741 = vmatpush1.msra.mxu0 %v2578_v49  ;;  %2050 = vmatpush3.msra.mxu1 %v2812_v27 }
 0x141   :  { %742 = vmatprep.subr.mxu0 %v2590_v51  ;;  %2051 = vmatprep.subr.mxu1 %v3799_v42 }
 0x142   :  { %743 = vmatpush1.msra.mxu0 %v2596_v52  ;;  %2052 = vmatpush3.msra.mxu1 %v2821_v28 }
 0x143   :  { %744 = vmatprep.subr.mxu0 %v2602_v53  ;;  %2053 = vmatprep.subr.mxu1 %v3799_v42 }
 0x144   :  { %745 = vmatpush1.msra.mxu0 %v2612_v55  ;;  %2054 = vmatpush3.msra.mxu1 %v2830_v29 }
 0x145   :  { %746 = vmatprep.subr.mxu0 %v2624_v57  ;;  %2055 = vmatprep.subr.mxu1 %v3799_v42 }
 0x146   :  { %747 = vmatpush1.msra.mxu0 %v2630_v58  ;;  %2056 = vmatpush3.msra.mxu1 %v2838_v30 }
 0x147   :  { %748 = vmatprep.subr.mxu0 %v2636_v59  ;;  %2057 = vmatprep.subr.mxu1 %v3799_v42 }
 0x148   :  { %749 = vmatpush1.msra.mxu0 %v2646_v61  ;;  %2058 = vmatpush3.msra.mxu1 %v2847_v31 }
 0x149   :  { %750 = vmatprep.subr.mxu0 %v2658_v63  ;;  %2059 = vmatprep.subr.mxu1 %v3799_v42 }
 0x14a   :  { %751 = vmatpush1.msra.mxu0 %v2664_v0  ;;  %2060 = vmatpush3.msra.mxu1 %v2856_v32 }
 0x14b   :  { %752 = vmatprep.subr.mxu0 %v2670_v1  ;;  %2061 = vmatprep.subr.mxu1 %v3799_v42 }
 0x14c   :  { %753 = vmatpush1.msra.mxu0 %v2680_v4  ;;  %2062 = vmatpush3.msra.mxu1 %v2863_v33 }
 0x14d   :  { %754 = vmatprep.subr.mxu0 %v2692_v6  ;;  %2063 = vmatprep.subr.mxu1 %v3799_v42 }
 0x14e   :  { %755 = vmatpush1.msra.mxu0 %v2698_v7  ;;  %2064 = vmatpush3.msra.mxu1 %v2872_v34 }
 0x14f   :  { %756 = vmatprep.subr.mxu0 %v2704_v8  ;;  %2065 = vmatprep.subr.mxu1 %v3799_v42 }
 0x150   :  { %757 = vmatpush1.msra.mxu0 %v2714_v10  ;;  %2066 = vmatpush3.msra.mxu1 %v2881_v35 }
 0x151   :  { %758 = vmatprep.subr.mxu0 %v2724_v12  ;;  %2067 = vmatprep.subr.mxu1 %v3799_v42 }
 0x152   :  { %759 = vmatpush1.msra.mxu0 %v2730_v13  ;;  %2068 = vmatpush3.msra.mxu1 %v2890_v36 }
 0x153   :  { %760 = vmatprep.subr.mxu0 %v2736_v14  ;;  %2069 = vmatprep.subr.mxu1 %v3799_v42 }
 0x154   :  { %761 = vmatpush1.msra.mxu0 %v2742_v15  ;;  %2070 = vmatpush3.msra.mxu1 %v2899_v37 }
 0x155   :  { %762 = vmatprep.subr.mxu0 %v2752_v17  ;;  %2071 = vmatprep.subr.mxu1 %v3799_v42 }
 0x156   :  { %763 = vmatpush1.msra.mxu0 %v2758_v18  ;;  %2072 = vmatpush3.msra.mxu1 %v2908_v38 }
 0x157   :  { %764 = vmatprep.subr.mxu0 %v2765_v19  ;;  %2073 = vmatprep.subr.mxu1 %v3799_v42 }
 0x158   :  { %765 = vmatpush1.msra.mxu0 %v2772_v20  ;;  %2074 = vmatpush3.msra.mxu1 %v2917_v39 }
 0x159   :  { %766 = vmatprep.subr.mxu0 %v2787_v23  ;;  %2075 = vmatprep.subr.mxu1 %v3799_v42 }
 0x15a   :  { %767 = vmatpush1.msra.mxu0 %v2793_v24  ;;  %2076 = vmatpush3.msra.mxu1 %v3800_v16 }
 0x15b   :  { %768 = vmatprep.subr.mxu0 %v3801_v43  ;;  %2077 = vmatprep.subr.mxu1 %v3799_v42  ;;  %v3807_v43 = vld [vmem:[#allocation22_spill] sm:$0xff] }
 0x15c   :  { %769 = vmatpush1.msra.mxu0 %v3802_v26  ;;  %802 = vmatprep.mubr.f32.mxu0 %v3799_v42 }
 0x15d   :  { %2078 = vmatpush3.msra.mxu1 %v3803_v40  ;;  %2079 = vmatprep.mubr.msk.f32.mxu1 %vm2389_vm0, %v3799_v42 }
 0x15e   :  { %906 = vmatprep.subr.mxu0 %v3804_v56  ;;  %2082 = vmatprep.subr.mxu1 %v3799_v42 }
 0x1fd   :  { %v636_v2 = vpop.f32.mrf.mxu0  ;;  %v707_v60 = vpop.f32.mrf.mxu1 }
 0x1fe   :  { %v711_v50 = vadd.f32 %v636_v2, %v3805_v54  ;;  %v725_v56 = vadd.f32 %v3042_v45, %v707_v60 }
 0x1ff   :  { %v2046_v62 = vpop.f32.mrf.mxu1  ;;  %v638_v5 = vpop.f32.mrf.mxu0 }
 0x200   :  { %v1759_v11 = vmul.f32 -1.442695, %v711_v50  ;;  %v718_v9 = vadd.f32 %v638_v5, %v3806_v48  ;;  %v3815_v48 = vld [vmem:[#allocation13_spill] sm:$0xff] }
 0x202   :  { %2269 = vpow2.f32 %v1759_v11  ;;  %v1760_v25 = vmul.f32 -1.442695, %v718_v9 }
 0x204   :  { %2271 = vpow2.f32 %v1760_v25  ;;  %v3809_v25 = vld [vmem:[#allocation8_spill] sm:$0xff] }
 0x20f   :  { %v2270_v44 = vpop.eup %2269 }
 0x210   :  { %v715_v3 = vadd.f32 1.0, %v2270_v44  ;;  %v3810_v44 = vld [vmem:[#allocation6_spill] sm:$0xff] }
 0x211   :  { %v2272_v41 = vpop.eup %2271 }
 0x212   :  { %2273 = vrcp.f32 %v715_v3  ;;  %v722_v24 = vadd.f32 1.0, %v2272_v41  ;;  %v3811_v3 = vld [vmem:[#allocation7_spill] sm:$0xff]  ;;  %v3812_v41 = vld [vmem:[#allocation9_spill] sm:$0xff] }
 0x21f   :  { %v2274_v40 = vpop.eup %2273 }
 0x220   :  { %v726_v26 = vmul.f32 %v2274_v40, %v725_v56 }
 0x222   :  { %v727_v16 = vadd.f32 %v726_v26, %v3807_v43  ;;  %v3814_v26 = vld [vmem:[#allocation12_spill] sm:$0xff] }
 0x224   :  { %2275 = vtanh.f32 %v727_v16 }
 0x225   :  { %2277 = vrcp.f32 %v722_v24  ;;  %v3808_v24 = vld [vmem:[#allocation5_spill] sm:$0xff] }
 0x231   :  { %v2276_v2 = vpop.eup %2275 }
 0x232   :  { %v729_v54 = vsub.f32 %v3045_v22, %v2276_v2  ;;  %v2278_v50 = vpop.eup %2277  ;;  %v3813_v22 = vld [vmem:[#allocation4_spill] sm:$0xff] }
 0x234   :  { %v730_v62 = vmul.f32 %v2278_v50, %v729_v54 }
 0x236   :  { %v3121_v11 = vadd.f32 %v2276_v2, %v730_v62 }
 0x238   :  { %803 = vmatmul.mubr.f32.vlgmr.msra.gmra.mxu0 %v3121_v11  ;;  %2080 = vmatmul.mubr.f32.vlgmr.msra.gmra.mxu1 %v3121_v11 }
 0x239   :  { %907 = vmatpush1.msra.mxu0 %v2563_v46  ;;  %2083 = vmatpush3.msra.mxu1 %v2777_v21 }
 0x23a   :  { %908 = vmatprep.subr.mxu0 %v2568_v47  ;;  %2084 = vmatprep.subr.mxu1 %v3799_v42 }
 0x23b   :  { %909 = vmatpush1.msra.mxu0 %v2578_v49  ;;  %2085 = vmatpush3.msra.mxu1 %v2812_v27 }
 0x23c   :  { %910 = vmatprep.subr.mxu0 %v2590_v51  ;;  %2086 = vmatprep.subr.mxu1 %v3799_v42 }
 0x23d   :  { %911 = vmatpush1.msra.mxu0 %v2596_v52  ;;  %2087 = vmatpush3.msra.mxu1 %v2821_v28 }
 0x23e   :  { %912 = vmatprep.subr.mxu0 %v2602_v53  ;;  %2088 = vmatprep.subr.mxu1 %v3799_v42 }
 0x23f   :  { %913 = vmatpush1.msra.mxu0 %v2612_v55  ;;  %2089 = vmatpush3.msra.mxu1 %v2830_v29 }
 0x240   :  { %914 = vmatprep.subr.mxu0 %v2624_v57  ;;  %2090 = vmatprep.subr.mxu1 %v3799_v42 }
 0x241   :  { %915 = vmatpush1.msra.mxu0 %v2630_v58  ;;  %2091 = vmatpush3.msra.mxu1 %v2838_v30 }
 0x242   :  { %916 = vmatprep.subr.mxu0 %v2636_v59  ;;  %2092 = vmatprep.subr.mxu1 %v3799_v42 }
 0x243   :  { %917 = vmatpush1.msra.mxu0 %v2646_v61  ;;  %2093 = vmatpush3.msra.mxu1 %v2847_v31 }
 0x244   :  { %918 = vmatprep.subr.mxu0 %v2658_v63  ;;  %2094 = vmatprep.subr.mxu1 %v3799_v42 }
 0x245   :  { %919 = vmatpush1.msra.mxu0 %v2664_v0  ;;  %2095 = vmatpush3.msra.mxu1 %v2856_v32 }
 0x246   :  { %920 = vmatprep.subr.mxu0 %v2670_v1  ;;  %2096 = vmatprep.subr.mxu1 %v3799_v42 }
 0x247   :  { %921 = vmatpush1.msra.mxu0 %v2680_v4  ;;  %2097 = vmatpush3.msra.mxu1 %v2863_v33 }
 0x248   :  { %922 = vmatprep.subr.mxu0 %v2692_v6  ;;  %2098 = vmatprep.subr.mxu1 %v3799_v42 }
 0x249   :  { %923 = vmatpush1.msra.mxu0 %v2698_v7  ;;  %2099 = vmatpush3.msra.mxu1 %v2872_v34 }
 0x24a   :  { %924 = vmatprep.subr.mxu0 %v2704_v8  ;;  %2100 = vmatprep.subr.mxu1 %v3799_v42 }
 0x24b   :  { %925 = vmatpush1.msra.mxu0 %v2714_v10  ;;  %2101 = vmatpush3.msra.mxu1 %v2881_v35 }
 0x24c   :  { %926 = vmatprep.subr.mxu0 %v2724_v12  ;;  %2102 = vmatprep.subr.mxu1 %v3799_v42 }
 0x24d   :  { %927 = vmatpush1.msra.mxu0 %v2730_v13  ;;  %2103 = vmatpush3.msra.mxu1 %v2890_v36 }
 0x24e   :  { %928 = vmatprep.subr.mxu0 %v2736_v14  ;;  %2104 = vmatprep.subr.mxu1 %v3799_v42 }
 0x24f   :  { %929 = vmatpush1.msra.mxu0 %v2742_v15  ;;  %2105 = vmatpush3.msra.mxu1 %v2899_v37 }
 0x250   :  { %930 = vmatprep.subr.mxu0 %v2752_v17  ;;  %2106 = vmatprep.subr.mxu1 %v3799_v42 }
 0x251   :  { %931 = vmatpush1.msra.mxu0 %v2758_v18  ;;  %2107 = vmatpush3.msra.mxu1 %v2908_v38 }
 0x252   :  { %932 = vmatprep.subr.mxu0 %v2765_v19  ;;  %2108 = vmatprep.subr.mxu1 %v3799_v42 }
 0x253   :  { %933 = vmatpush1.msra.mxu0 %v2772_v20  ;;  %2109 = vmatpush3.msra.mxu1 %v2917_v39 }
 0x254   :  { %934 = vmatprep.subr.mxu0 %v2787_v23  ;;  %2110 = vmatprep.subr.mxu1 %v3799_v42 }
 0x255   :  { %935 = vmatpush1.msra.mxu0 %v3808_v24  ;;  %2111 = vmatpush3.msra.mxu1 %v3809_v25 }
 0x256   :  { %936 = vmatprep.subr.mxu0 %v3810_v44  ;;  %2112 = vmatprep.subr.mxu1 %v3799_v42  ;;  %v3816_v44 = vld [vmem:[#allocation26_spill] sm:$0xff] }
 0x257   :  { %937 = vmatpush1.msra.mxu0 %v3811_v3  ;;  %970 = vmatprep.mubr.f32.mxu0 %v3799_v42 }
 0x258   :  { %2113 = vmatpush3.msra.mxu1 %v3812_v41  ;;  %2114 = vmatprep.mubr.msk.f32.mxu1 %vm2389_vm0, %v3799_v42 }
 0x259   :  { %1074 = vmatprep.subr.mxu0 %v3813_v22  ;;  %2117 = vmatprep.subr.mxu1 %v3799_v42 }
 0x2f8   :  { %v804_v16 = vpop.f32.mrf.mxu0  ;;  %v875_v43 = vpop.f32.mrf.mxu1 }
 0x2f9   :  { %v879_v40 = vadd.f32 %v804_v16, %v3814_v26  ;;  %v893_v22 = vadd.f32 %v3042_v45, %v875_v43  ;;  %v3318_v43 = vld [vmem:[%s3749_s2 + $0x138] sm:$0xff] }
 0x2fa   :  { %v2081_v56 = vpop.f32.mrf.mxu1  ;;  %v806_v5 = vpop.f32.mrf.mxu0 }
 0x2fb   :  { %v1761_v60 = vmul.f32 -1.442695, %v879_v40  ;;  %v886_v9 = vadd.f32 %v806_v5, %v3815_v48  ;;  %v3332_v5 = vld [vmem:[%s3749_s2 + $0x120] sm:$0xff]  ;;  %v3346_v48 = vld [vmem:[%s3749_s2 + $0x108] sm:$0xff] }
 0x2fd   :  { %2279 = vpow2.f32 %v1761_v60  ;;  %v1762_v2 = vmul.f32 -1.442695, %v886_v9  ;;  %v3360_v9 = vld [vmem:[%s3749_s2 + $0xf0] sm:$0xff] }
 0x2ff   :  { %2281 = vpow2.f32 %v1762_v2  ;;  %v3374_v2 = vld [vmem:[%s3749_s2 + $0xd8] sm:$0xff] }
 0x30a   :  { %v2280_v54 = vpop.eup %2279 }
 0x30b   :  { %v883_v50 = vadd.f32 1.0, %v2280_v54  ;;  %v3388_v54 = vld [vmem:[%s3749_s2 + $0xc0] sm:$0xff] }
 0x30c   :  { %v2282_v62 = vpop.eup %2281 }
 0x30d   :  { %2283 = vrcp.f32 %v883_v50  ;;  %v890_v24 = vadd.f32 1.0, %v2282_v62  ;;  %v3402_v50 = vld [vmem:[%s3749_s2 + $0xa8] sm:$0xff]  ;;  %v3416_v62 = vld [vmem:[%s3749_s2 + $0x90] sm:$0xff] }
 0x31a   :  { %v2284_v41 = vpop.eup %2283 }
 0x31b   :  { %v894_v3 = vmul.f32 %v2284_v41, %v893_v22  ;;  %v3311_v41 = vld [vmem:[%s3749_s2 + $0x140] sm:$0xff]  ;;  %v3430_v22 = vld [vmem:[%s3749_s2 + $0x78] sm:$0xff] }
 0x31d   :  { %v895_v25 = vadd.f32 %v894_v3, %v3816_v44  ;;  %v3297_v44 = vld [vmem:[%s3749_s2 + $0x158] sm:$0xff]  ;;  %v3304_v3 = vld [vmem:[%s3749_s2 + $0x150] sm:$0xff] }
 0x31f   :  { %2285 = vtanh.f32 %v895_v25  ;;  %v3291_v25 = vld [vmem:[%s3749_s2 + $0x178] sm:$0xff] }
 0x320   :  { %2287 = vrcp.f32 %v890_v24  ;;  %v3285_v24 = vld [vmem:[%s3749_s2 + $0x168] sm:$0xff] }
 0x32c   :  { %v2286_v16 = vpop.eup %2285 }
 0x32d   :  { %v897_v26 = vsub.f32 %v3121_v11, %v2286_v16  ;;  %v2288_v40 = vpop.eup %2287 }
 0x32f   :  { %v898_v56 = vmul.f32 %v2288_v40, %v897_v26  ;;  %v3458_v26 = vld [vmem:[%s3749_s2 + $0x48] sm:$0xff]  ;;  %v3472_v40 = vld [vmem:[%s3749_s2 + $0x30] sm:$0xff] }
 0x331   :  { %v3197_v60 = vadd.f32 %v2286_v16, %v898_v56  ;;  %v3444_v16 = vld [vmem:[%s3749_s2 + $0x60] sm:$0xff]  ;;  %v3486_v56 = vld [vmem:[%s3749_s2 + $0x18] sm:$0xff] }
 0x332   :  { %3825 = vst [vmem:[#allocation10_spill] sm:$0xff] %v3486_v56 }
 0x333   :  { %971 = vmatmul.mubr.f32.vlgmr.msra.gmra.mxu0 %v3197_v60  ;;  %2115 = vmatmul.mubr.f32.vlgmr.msra.gmra.mxu1 %v3197_v60 }
 0x334   :  { %1075 = vmatpush1.msra.mxu0 %v2563_v46  ;;  %2118 = vmatpush3.msra.mxu1 %v2777_v21  ;;  %v3817_v46 = vld [vmem:[#allocation5_spill] sm:$0xff] }
 0x335   :  { %1076 = vmatprep.subr.mxu0 %v2568_v47  ;;  %2119 = vmatprep.subr.mxu1 %v3799_v42  ;;  %v3818_v47 = vld [vmem:[#allocation8_spill] sm:$0xff] }
 0x336   :  { %1077 = vmatpush1.msra.mxu0 %v2578_v49  ;;  %2120 = vmatpush3.msra.mxu1 %v2812_v27  ;;  %v3819_v49 = vld [vmem:[#allocation6_spill] sm:$0xff] }
 0x337   :  { %1078 = vmatprep.subr.mxu0 %v2590_v51  ;;  %2121 = vmatprep.subr.mxu1 %v3799_v42  ;;  %v3820_v51 = vld [vmem:[#allocation7_spill] sm:$0xff] }
 0x338   :  { %1079 = vmatpush1.msra.mxu0 %v2596_v52  ;;  %2122 = vmatpush3.msra.mxu1 %v2821_v28  ;;  %v3821_v52 = vld [vmem:[#allocation9_spill] sm:$0xff] }
 0x339   :  { %1080 = vmatprep.subr.mxu0 %v2602_v53  ;;  %2123 = vmatprep.subr.mxu1 %v3799_v42  ;;  %v3269_v53 = vld [vmem:[%s3749_s2 + $0x170] sm:$0xff] }
 0x33a   :  { %1081 = vmatpush1.msra.mxu0 %v2612_v55  ;;  %2124 = vmatpush3.msra.mxu1 %v2830_v29 }
 0x33b   :  { %1082 = vmatprep.subr.mxu0 %v2624_v57  ;;  %2125 = vmatprep.subr.mxu1 %v3799_v42 }
 0x33c   :  { %1083 = vmatpush1.msra.mxu0 %v2630_v58  ;;  %2126 = vmatpush3.msra.mxu1 %v2838_v30  ;;  %v3822_v58 = vld [vmem:[#allocation14_spill] sm:$0xff] }
 0x33d   :  { %1084 = vmatprep.subr.mxu0 %v2636_v59  ;;  %2127 = vmatprep.subr.mxu1 %v3799_v42 }
 0x33e   :  { %1085 = vmatpush1.msra.mxu0 %v2646_v61  ;;  %2128 = vmatpush3.msra.mxu1 %v2847_v31 }
 0x33f   :  { %1086 = vmatprep.subr.mxu0 %v2658_v63  ;;  %2129 = vmatprep.subr.mxu1 %v3799_v42 }
 0x340   :  { %1087 = vmatpush1.msra.mxu0 %v2664_v0  ;;  %2130 = vmatpush3.msra.mxu1 %v2856_v32 }
 0x341   :  { %1088 = vmatprep.subr.mxu0 %v2670_v1  ;;  %2131 = vmatprep.subr.mxu1 %v3799_v42  ;;  %v3823_v1 = vld [vmem:[#allocation15_spill] sm:$0xff] }
 0x342   :  { %1089 = vmatpush1.msra.mxu0 %v2680_v4  ;;  %2132 = vmatpush3.msra.mxu1 %v2863_v33 }
 0x343   :  { %1090 = vmatprep.subr.mxu0 %v2692_v6  ;;  %2133 = vmatprep.subr.mxu1 %v3799_v42 }
 0x344   :  { %1091 = vmatpush1.msra.mxu0 %v2698_v7  ;;  %2134 = vmatpush3.msra.mxu1 %v2872_v34 }
 0x345   :  { %1092 = vmatprep.subr.mxu0 %v2704_v8  ;;  %2135 = vmatprep.subr.mxu1 %v3799_v42 }
 0x346   :  { %1093 = vmatpush1.msra.mxu0 %v2714_v10  ;;  %2136 = vmatpush3.msra.mxu1 %v2881_v35 }
 0x347   :  { %1094 = vmatprep.subr.mxu0 %v2724_v12  ;;  %2137 = vmatprep.subr.mxu1 %v3799_v42 }
 0x348   :  { %1095 = vmatpush1.msra.mxu0 %v2730_v13  ;;  %2138 = vmatpush3.msra.mxu1 %v2890_v36 }
 0x349   :  { %1096 = vmatprep.subr.mxu0 %v2736_v14  ;;  %2139 = vmatprep.subr.mxu1 %v3799_v42 }
 0x34a   :  { %1097 = vmatpush1.msra.mxu0 %v2742_v15  ;;  %2140 = vmatpush3.msra.mxu1 %v2899_v37  ;;  %v3824_v15 = vld [vmem:[#allocation25_spill] sm:$0xff] }
 0x34b   :  { %1098 = vmatprep.subr.mxu0 %v2752_v17  ;;  %2141 = vmatprep.subr.mxu1 %v3799_v42 }
 0x34c   :  { %1099 = vmatpush1.msra.mxu0 %v2758_v18  ;;  %2142 = vmatpush3.msra.mxu1 %v2908_v38 }
 0x34d   :  { %1100 = vmatprep.subr.mxu0 %v2765_v19  ;;  %2143 = vmatprep.subr.mxu1 %v3799_v42 }
 0x34e   :  { %1101 = vmatpush1.msra.mxu0 %v2772_v20  ;;  %2144 = vmatpush3.msra.mxu1 %v2917_v39 }
 0x34f   :  { %1102 = vmatprep.subr.mxu0 %v2787_v23  ;;  %2145 = vmatprep.subr.mxu1 %v3799_v42 }
 0x350   :  { %1103 = vmatpush1.msra.mxu0 %v3817_v46  ;;  %2146 = vmatpush3.msra.mxu1 %v3818_v47 }
 0x351   :  { %1104 = vmatprep.subr.mxu0 %v3819_v49  ;;  %2147 = vmatprep.subr.mxu1 %v3799_v42  ;;  %v3828_v49 = vld [vmem:[#allocation16_spill] sm:$0xff] }
 0x352   :  { %1105 = vmatpush1.msra.mxu0 %v3820_v51  ;;  %1138 = vmatprep.mubr.f32.mxu0 %v3799_v42 }
 0x353   :  { %2148 = vmatpush3.msra.mxu1 %v3821_v52  ;;  %2149 = vmatprep.mubr.msk.f32.mxu1 %vm2389_vm0, %v3799_v42 }
 0x354   :  { %1242 = vmatprep.subr.mxu0 %v3269_v53  ;;  %2152 = vmatprep.subr.mxu1 %v3799_v42 }
 0x3f3   :  { %v972_v55 = vpop.f32.mrf.mxu0  ;;  %v1043_v57 = vpop.f32.mrf.mxu1 }
 0x3f4   :  { %v1047_v59 = vadd.f32 %v972_v55, %v3822_v58  ;;  %v1061_v12 = vadd.f32 %v3042_v45, %v1043_v57 }
 0x3f5   :  { %v2116_v61 = vpop.f32.mrf.mxu1  ;;  %v974_v0 = vpop.f32.mrf.mxu0 }
 0x3f6   :  { %v1763_v63 = vmul.f32 -1.442695, %v1047_v59  ;;  %v1054_v4 = vadd.f32 %v974_v0, %v3823_v1  ;;  %v3829_v59 = vld [vmem:[#allocation17_spill] sm:$0xff] }
 0x3f8   :  { %2289 = vpow2.f32 %v1763_v63  ;;  %v1764_v6 = vmul.f32 -1.442695, %v1054_v4 }
 0x3fa   :  { %2291 = vpow2.f32 %v1764_v6 }
 0x405   :  { %v2290_v7 = vpop.eup %2289 }
 0x406   :  { %v1051_v8 = vadd.f32 1.0, %v2290_v7 }
 0x407   :  { %v2292_v10 = vpop.eup %2291 }
 0x408   :  { %2293 = vrcp.f32 %v1051_v8  ;;  %v1058_v18 = vadd.f32 1.0, %v2292_v10  ;;  %v3830_v8 = vld [vmem:[#allocation28_spill] sm:$0xff] }
 0x415   :  { %v2294_v13 = vpop.eup %2293 }
 0x416   :  { %v1062_v14 = vmul.f32 %v2294_v13, %v1061_v12 }
 0x418   :  { %v1063_v17 = vadd.f32 %v1062_v14, %v3824_v15 }
 0x41a   :  { %2295 = vtanh.f32 %v1063_v17 }
 0x41b   :  { %2297 = vrcp.f32 %v1058_v18 }
 0x427   :  { %v2296_v19 = vpop.eup %2295 }
 0x428   :  { %v1065_v20 = vsub.f32 %v3197_v60, %v2296_v19  ;;  %v2298_v21 = vpop.eup %2297  ;;  %v3500_v60 = vld [vmem:[%s3749_s2] sm:$0xff] }
 0x429   :  { %3827 = vst [vmem:[#allocation22_spill] sm:$0xff] %v3500_v60 }
 0x42a   :  { %v1066_v23 = vmul.f32 %v2298_v21, %v1065_v20  ;;  %v3535_v20 = vld [vmem:[%s3749_s2 + $0x148] sm:$0xff]  ;;  %v3544_v21 = vld [vmem:[%s3749_s2 + $0x130] sm:$0xff] }
 0x42c   :  { %v3278_v11 = vadd.f32 %v2296_v19, %v1066_v23  ;;  %v3526_v19 = vld [vmem:[%s3749_s2 + $0x160] sm:$0xff]  ;;  %v3553_v23 = vld [vmem:[%s3749_s2 + $0x118] sm:$0xff] }
 0x42e   :  { %1139 = vmatmul.mubr.f32.vlgmr.msra.gmra.mxu0 %v3278_v11  ;;  %2150 = vmatmul.mubr.f32.vlgmr.msra.gmra.mxu1 %v3278_v11 }
 0x42f   :  { %1243 = vmatpush1.msra.mxu0 %v3285_v24  ;;  %2153 = vmatpush3.msra.mxu1 %v3291_v25 }
 0x430   :  { %1244 = vmatprep.subr.mxu0 %v3297_v44  ;;  %2154 = vmatprep.subr.mxu1 %v3799_v42 }
 0x431   :  { %1245 = vmatpush1.msra.mxu0 %v3304_v3  ;;  %2155 = vmatpush3.msra.mxu1 %v2812_v27  ;;  %v3325_v27 = vld [vmem:[%s3749_s2 + $0x128] sm:$0xff] }
 0x432   :  { %1246 = vmatprep.subr.mxu0 %v3311_v41  ;;  %2156 = vmatprep.subr.mxu1 %v3799_v42 }
 0x433   :  { %1247 = vmatpush1.msra.mxu0 %v3318_v43  ;;  %2157 = vmatpush3.msra.mxu1 %v2821_v28  ;;  %v3339_v28 = vld [vmem:[%s3749_s2 + $0x110] sm:$0xff] }
 0x434   :  { %1248 = vmatprep.subr.mxu0 %v3325_v27  ;;  %2158 = vmatprep.subr.mxu1 %v3799_v42 }
 0x435   :  { %1249 = vmatpush1.msra.mxu0 %v3332_v5  ;;  %2159 = vmatpush3.msra.mxu1 %v2830_v29  ;;  %v3353_v29 = vld [vmem:[%s3749_s2 + $0xf8] sm:$0xff] }
 0x436   :  { %1250 = vmatprep.subr.mxu0 %v3339_v28  ;;  %2160 = vmatprep.subr.mxu1 %v3799_v42 }
 0x437   :  { %1251 = vmatpush1.msra.mxu0 %v3346_v48  ;;  %2161 = vmatpush3.msra.mxu1 %v2838_v30  ;;  %v3367_v30 = vld [vmem:[%s3749_s2 + $0xe0] sm:$0xff] }
 0x438   :  { %1252 = vmatprep.subr.mxu0 %v3353_v29  ;;  %2162 = vmatprep.subr.mxu1 %v3799_v42 }
 0x439   :  { %1253 = vmatpush1.msra.mxu0 %v3360_v9  ;;  %2163 = vmatpush3.msra.mxu1 %v2847_v31  ;;  %v3381_v31 = vld [vmem:[%s3749_s2 + $0xc8] sm:$0xff] }
 0x43a   :  { %1254 = vmatprep.subr.mxu0 %v3367_v30  ;;  %2164 = vmatprep.subr.mxu1 %v3799_v42 }
 0x43b   :  { %1255 = vmatpush1.msra.mxu0 %v3374_v2  ;;  %2165 = vmatpush3.msra.mxu1 %v2856_v32  ;;  %v3395_v32 = vld [vmem:[%s3749_s2 + $0xb0] sm:$0xff] }
 0x43c   :  { %1256 = vmatprep.subr.mxu0 %v3381_v31  ;;  %2166 = vmatprep.subr.mxu1 %v3799_v42 }
 0x43d   :  { %1257 = vmatpush1.msra.mxu0 %v3388_v54  ;;  %2167 = vmatpush3.msra.mxu1 %v2863_v33  ;;  %v3409_v33 = vld [vmem:[%s3749_s2 + $0x98] sm:$0xff] }
 0x43e   :  { %1258 = vmatprep.subr.mxu0 %v3395_v32  ;;  %2168 = vmatprep.subr.mxu1 %v3799_v42 }
 0x43f   :  { %1259 = vmatpush1.msra.mxu0 %v3402_v50  ;;  %2169 = vmatpush3.msra.mxu1 %v2872_v34  ;;  %v3423_v34 = vld [vmem:[%s3749_s2 + $0x80] sm:$0xff] }
 0x440   :  { %1260 = vmatprep.subr.mxu0 %v3409_v33  ;;  %2170 = vmatprep.subr.mxu1 %v3799_v42 }
 0x441   :  { %1261 = vmatpush1.msra.mxu0 %v3416_v62  ;;  %2171 = vmatpush3.msra.mxu1 %v2881_v35  ;;  %v3437_v35 = vld [vmem:[%s3749_s2 + $0x68] sm:$0xff] }
 0x442   :  { %1262 = vmatprep.subr.mxu0 %v3423_v34  ;;  %2172 = vmatprep.subr.mxu1 %v3799_v42 }
 0x443   :  { %1263 = vmatpush1.msra.mxu0 %v3430_v22  ;;  %2173 = vmatpush3.msra.mxu1 %v2890_v36  ;;  %v3451_v36 = vld [vmem:[%s3749_s2 + $0x50] sm:$0xff] }
 0x444   :  { %1264 = vmatprep.subr.mxu0 %v3437_v35  ;;  %2174 = vmatprep.subr.mxu1 %v3799_v42 }
 0x445   :  { %1265 = vmatpush1.msra.mxu0 %v3444_v16  ;;  %2175 = vmatpush3.msra.mxu1 %v2899_v37  ;;  %v3465_v37 = vld [vmem:[%s3749_s2 + $0x38] sm:$0xff] }
 0x446   :  { %1266 = vmatprep.subr.mxu0 %v3451_v36  ;;  %2176 = vmatprep.subr.mxu1 %v3799_v42 }
 0x447   :  { %1267 = vmatpush1.msra.mxu0 %v3458_v26  ;;  %2177 = vmatpush3.msra.mxu1 %v2908_v38  ;;  %v3479_v38 = vld [vmem:[%s3749_s2 + $0x20] sm:$0xff] }
 0x448   :  { %1268 = vmatprep.subr.mxu0 %v3465_v37  ;;  %2178 = vmatprep.subr.mxu1 %v3799_v42 }
 0x449   :  { %1269 = vmatpush1.msra.mxu0 %v3472_v40  ;;  %2179 = vmatpush3.msra.mxu1 %v2917_v39  ;;  %v3493_v39 = vld [vmem:[%s3749_s2 + $0x8] sm:$0xff] }
 0x44a   :  { %1270 = vmatprep.subr.mxu0 %v3479_v38  ;;  %2180 = vmatprep.subr.mxu1 %v3799_v42  ;;  %3826 = vst [vmem:[#allocation11_spill] sm:$0xff] %v3493_v39 }
 0x44b   :  { %1271 = vmatpush1.msra.mxu0 %v3486_v56  ;;  %2181 = vmatpush3.msra.mxu1 %v3818_v47 }
 0x44c   :  { %1272 = vmatprep.subr.mxu0 %v3493_v39  ;;  %2182 = vmatprep.subr.mxu1 %v3799_v42 }
 0x44d   :  { %1273 = vmatpush1.msra.mxu0 %v3500_v60  ;;  %1306 = vmatprep.mubr.f32.mxu0 %v3799_v42 }
 0x44e   :  { %2183 = vmatpush3.msra.mxu1 %v3821_v52  ;;  %2184 = vmatprep.mubr.msk.f32.mxu1 %vm2389_vm0, %v3799_v42 }
 0x44f   :  { %1410 = vmatprep.subr.mxu0 %v3269_v53  ;;  %2187 = vmatprep.subr.mxu1 %v3799_v42 }
 0x4ee   :  { %v1140_v46 = vpop.f32.mrf.mxu0  ;;  %v1211_v47 = vpop.f32.mrf.mxu1 }
 0x4ef   :  { %v1215_v51 = vadd.f32 %v1140_v46, %v3828_v49  ;;  %v1229_v4 = vadd.f32 %v3042_v45, %v1211_v47  ;;  %v3571_v46 = vld [vmem:[%s3749_s2 + $0xe8] sm:$0xff]  ;;  %v3580_v47 = vld [vmem:[%s3749_s2 + $0xd0] sm:$0xff]  ;;  %v3589_v49 = vld [vmem:[%s3749_s2 + $0xb8] sm:$0xff] }
 0x4f0   :  { %v2151_v55 = vpop.f32.mrf.mxu1  ;;  %v1142_v58 = vpop.f32.mrf.mxu0 }
 0x4f1   :  { %v1765_v57 = vmul.f32 -1.442695, %v1215_v51  ;;  %v1222_v61 = vadd.f32 %v1142_v58, %v3829_v59  ;;  %v3598_v51 = vld [vmem:[%s3749_s2 + $0xa0] sm:$0xff]  ;;  %v3607_v55 = vld [vmem:[%s3749_s2 + $0x88] sm:$0xff]  ;;  %v3625_v58 = vld [vmem:[%s3749_s2 + $0x58] sm:$0xff] }
 0x4f2   :  { %v3634_v59 = vld [vmem:[%s3749_s2 + $0x40] sm:$0xff] }
 0x4f3   :  { %2299 = vpow2.f32 %v1765_v57  ;;  %v1766_v63 = vmul.f32 -1.442695, %v1222_v61  ;;  %v3616_v57 = vld [vmem:[%s3749_s2 + $0x70] sm:$0xff]  ;;  %v3643_v61 = vld [vmem:[%s3749_s2 + $0x28] sm:$0xff] }
 0x4f4   :  { %3831 = vst [vmem:[#allocation4_spill] sm:$0xff] %v3643_v61 }
 0x4f5   :  { %2301 = vpow2.f32 %v1766_v63  ;;  %v3653_v63 = vld [vmem:[%s3749_s2 + $0x10] sm:$0xff] }
 0x4f6   :  { %3832 = vst [vmem:[#allocation12_spill] sm:$0xff] %v3653_v63 }
 0x500   :  { %v2300_v0 = vpop.eup %2299 }
 0x501   :  { %v1219_v52 = vadd.f32 1.0, %v2300_v0 }
 0x502   :  { %v2302_v1 = vpop.eup %2301 }
 0x503   :  { %2303 = vrcp.f32 %v1219_v52  ;;  %v1226_v12 = vadd.f32 1.0, %v2302_v1  ;;  %v3833_v1 = vld [vmem:[#allocation18_spill] sm:$0xff] }
 0x510   :  { %v2304_v6 = vpop.eup %2303 }
 0x511   :  { %v1230_v7 = vmul.f32 %v2304_v6, %v1229_v4 }
 0x513   :  { %v1231_v10 = vadd.f32 %v1230_v7, %v3830_v8 }
 0x515   :  { %2305 = vtanh.f32 %v1231_v10  ;;  %v3834_v10 = vld [vmem:[#allocation19_spill] sm:$0xff] }
 0x516   :  { %2307 = vrcp.f32 %v1226_v12 }
 0x522   :  { %v2306_v13 = vpop.eup %2305 }
 0x523   :  { %v1233_v14 = vsub.f32 %v3278_v11, %v2306_v13  ;;  %v2308_v15 = vpop.eup %2307  ;;  %v3562_v11 = vld [vmem:[%s3749_s2 + $0x100] sm:$0xff] }
 0x525   :  { %v1234_v17 = vmul.f32 %v2308_v15, %v1233_v14 }
 0x527   :  { %v3514_v18 = vadd.f32 %v2306_v13, %v1234_v17 }
 0x529   :  { %1307 = vmatmul.mubr.f32.vlgmr.msra.gmra.mxu0 %v3514_v18  ;;  %2185 = vmatmul.mubr.f32.vlgmr.msra.gmra.mxu1 %v3514_v18 }
 0x52a   :  { %1411 = vmatpush1.msra.mxu0 %v3285_v24  ;;  %2188 = vmatpush3.msra.mxu1 %v3291_v25 }
 0x52b   :  { %1412 = vmatprep.subr.mxu0 %v3297_v44  ;;  %2189 = vmatprep.subr.mxu1 %v3799_v42 }
 0x52c   :  { %1413 = vmatpush1.msra.mxu0 %v3304_v3  ;;  %2190 = vmatpush3.msra.mxu1 %v3526_v19 }
 0x52d   :  { %1414 = vmatprep.subr.mxu0 %v3311_v41  ;;  %2191 = vmatprep.subr.mxu1 %v3799_v42 }
 0x52e   :  { %1415 = vmatpush1.msra.mxu0 %v3318_v43  ;;  %2192 = vmatpush3.msra.mxu1 %v3535_v20 }
 0x52f   :  { %1416 = vmatprep.subr.mxu0 %v3325_v27  ;;  %2193 = vmatprep.subr.mxu1 %v3799_v42 }
 0x530   :  { %1417 = vmatpush1.msra.mxu0 %v3332_v5  ;;  %2194 = vmatpush3.msra.mxu1 %v3544_v21 }
 0x531   :  { %1418 = vmatprep.subr.mxu0 %v3339_v28  ;;  %2195 = vmatprep.subr.mxu1 %v3799_v42 }
 0x532   :  { %1419 = vmatpush1.msra.mxu0 %v3346_v48  ;;  %2196 = vmatpush3.msra.mxu1 %v3553_v23 }
 0x533   :  { %1420 = vmatprep.subr.mxu0 %v3353_v29  ;;  %2197 = vmatprep.subr.mxu1 %v3799_v42 }
 0x534   :  { %1421 = vmatpush1.msra.mxu0 %v3360_v9  ;;  %2198 = vmatpush3.msra.mxu1 %v3562_v11 }
 0x535   :  { %1422 = vmatprep.subr.mxu0 %v3367_v30  ;;  %2199 = vmatprep.subr.mxu1 %v3799_v42 }
 0x536   :  { %1423 = vmatpush1.msra.mxu0 %v3374_v2  ;;  %2200 = vmatpush3.msra.mxu1 %v3571_v46 }
 0x537   :  { %1424 = vmatprep.subr.mxu0 %v3381_v31  ;;  %2201 = vmatprep.subr.mxu1 %v3799_v42 }
 0x538   :  { %1425 = vmatpush1.msra.mxu0 %v3388_v54  ;;  %2202 = vmatpush3.msra.mxu1 %v3580_v47 }
 0x539   :  { %1426 = vmatprep.subr.mxu0 %v3395_v32  ;;  %2203 = vmatprep.subr.mxu1 %v3799_v42 }
 0x53a   :  { %1427 = vmatpush1.msra.mxu0 %v3402_v50  ;;  %2204 = vmatpush3.msra.mxu1 %v3589_v49 }
 0x53b   :  { %1428 = vmatprep.subr.mxu0 %v3409_v33  ;;  %2205 = vmatprep.subr.mxu1 %v3799_v42 }
 0x53c   :  { %1429 = vmatpush1.msra.mxu0 %v3416_v62  ;;  %2206 = vmatpush3.msra.mxu1 %v3598_v51 }
 0x53d   :  { %1430 = vmatprep.subr.mxu0 %v3423_v34  ;;  %2207 = vmatprep.subr.mxu1 %v3799_v42 }
 0x53e   :  { %1431 = vmatpush1.msra.mxu0 %v3430_v22  ;;  %2208 = vmatpush3.msra.mxu1 %v3607_v55 }
 0x53f   :  { %1432 = vmatprep.subr.mxu0 %v3437_v35  ;;  %2209 = vmatprep.subr.mxu1 %v3799_v42 }
 0x540   :  { %1433 = vmatpush1.msra.mxu0 %v3444_v16  ;;  %2210 = vmatpush3.msra.mxu1 %v3616_v57 }
 0x541   :  { %1434 = vmatprep.subr.mxu0 %v3451_v36  ;;  %2211 = vmatprep.subr.mxu1 %v3799_v42 }
 0x542   :  { %1435 = vmatpush1.msra.mxu0 %v3458_v26  ;;  %2212 = vmatpush3.msra.mxu1 %v3625_v58 }
 0x543   :  { %1436 = vmatprep.subr.mxu0 %v3465_v37  ;;  %2213 = vmatprep.subr.mxu1 %v3799_v42 }
 0x544   :  { %1437 = vmatpush1.msra.mxu0 %v3472_v40  ;;  %2214 = vmatpush3.msra.mxu1 %v3634_v59 }
 0x545   :  { %1438 = vmatprep.subr.mxu0 %v3479_v38  ;;  %2215 = vmatprep.subr.mxu1 %v3799_v42 }
 0x546   :  { %1439 = vmatpush1.msra.mxu0 %v3486_v56  ;;  %2216 = vmatpush3.msra.mxu1 %v3643_v61 }
 0x547   :  { %1440 = vmatprep.subr.mxu0 %v3493_v39  ;;  %2217 = vmatprep.subr.mxu1 %v3799_v42  ;;  %v3835_v39 = vld [vmem:[#allocation27_spill] sm:$0xff] }
 0x548   :  { %1441 = vmatpush1.msra.mxu0 %v3500_v60  ;;  %1474 = vmatprep.mubr.f32.mxu0 %v3799_v42 }
 0x549   :  { %2218 = vmatpush3.msra.mxu1 %v3653_v63  ;;  %2219 = vmatprep.mubr.msk.f32.mxu1 %vm2389_vm0, %v3799_v42 }
 0x54a   :  { %1578 = vmatprep.subr.mxu0 %v3269_v53  ;;  %2222 = vmatprep.subr.mxu1 %v3799_v42 }
 0x5e9   :  { %v1308_v0 = vpop.f32.mrf.mxu0  ;;  %v1379_v52 = vpop.f32.mrf.mxu1 }
 0x5ea   :  { %v1383_v4 = vadd.f32 %v1308_v0, %v3833_v1  ;;  %v1397_v53 = vadd.f32 %v3042_v45, %v1379_v52  ;;  %v3836_v45 = vld [vmem:[#allocation10_spill] sm:$0xff] }
 0x5eb   :  { %v2186_v6 = vpop.f32.mrf.mxu1  ;;  %v1310_v8 = vpop.f32.mrf.mxu0 }
 0x5ec   :  { %v1767_v7 = vmul.f32 -1.442695, %v1383_v4  ;;  %v1390_v12 = vadd.f32 %v1310_v8, %v3834_v10 }
 0x5ee   :  { %2309 = vpow2.f32 %v1767_v7  ;;  %v1768_v13 = vmul.f32 -1.442695, %v1390_v12 }
 0x5f0   :  { %2311 = vpow2.f32 %v1768_v13 }
 0x5fb   :  { %v2310_v14 = vpop.eup %2309 }
 0x5fc   :  { %v1387_v15 = vadd.f32 1.0, %v2310_v14 }
 0x5fd   :  { %v2312_v17 = vpop.eup %2311 }
 0x5fe   :  { %2313 = vrcp.f32 %v1387_v15  ;;  %v1394_v56 = vadd.f32 1.0, %v2312_v17 }
 0x60b   :  { %v2314_v63 = vpop.eup %2313 }
 0x60c   :  { %v1398_v60 = vmul.f32 %v2314_v63, %v1397_v53 }
 0x60e   :  { %v1399_v61 = vadd.f32 %v1398_v60, %v3835_v39  ;;  %v3844_v39 = vld [vmem:[#allocation23_spill] sm:$0xff] }
 0x610   :  { %2315 = vtanh.f32 %v1399_v61 }
 0x611   :  { %2317 = vrcp.f32 %v1394_v56 }
 0x61d   :  { %v2316_v0 = vpop.eup %2315 }
 0x61e   :  { %v1401_v1 = vsub.f32 %v3514_v18, %v2316_v0  ;;  %v2318_v4 = vpop.eup %2317 }
 0x620   :  { %v1402_v6 = vmul.f32 %v2318_v4, %v1401_v1 }
 0x622   :  { %v3665_v7 = vadd.f32 %v2316_v0, %v1402_v6 }
 0x624   :  { %1475 = vmatmul.mubr.f32.vlgmr.msra.gmra.mxu0 %v3665_v7  ;;  %2220 = vmatmul.mubr.f32.vlgmr.msra.gmra.mxu1 %v3665_v7 }
 0x625   :  { %1579 = vmatpush1.msra.mxu0 %v3285_v24  ;;  %2223 = vmatpush3.msra.mxu1 %v3291_v25  ;;  %v3837_v24 = vld [vmem:[#allocation4_spill] sm:$0xff]  ;;  %v3838_v25 = vld [vmem:[#allocation11_spill] sm:$0xff] }
 0x626   :  { %1580 = vmatprep.subr.mxu0 %v3297_v44  ;;  %2224 = vmatprep.subr.mxu1 %v3799_v42  ;;  %v3839_v44 = vld [vmem:[#allocation22_spill] sm:$0xff] }
 0x627   :  { %1581 = vmatpush1.msra.mxu0 %v3304_v3  ;;  %2225 = vmatpush3.msra.mxu1 %v3526_v19  ;;  %v3840_v3 = vld [vmem:[#allocation12_spill] sm:$0xff] }
 0x628   :  { %1582 = vmatprep.subr.mxu0 %v3311_v41  ;;  %2226 = vmatprep.subr.mxu1 %v3799_v42 }
 0x629   :  { %1583 = vmatpush1.msra.mxu0 %v3318_v43  ;;  %2227 = vmatpush3.msra.mxu1 %v3535_v20 }
 0x62a   :  { %1584 = vmatprep.subr.mxu0 %v3325_v27  ;;  %2228 = vmatprep.subr.mxu1 %v3799_v42  ;;  %v3841_v27 = vld [vmem:[#allocation20_spill] sm:$0xff] }
 0x62b   :  { %1585 = vmatpush1.msra.mxu0 %v3332_v5  ;;  %2229 = vmatpush3.msra.mxu1 %v3544_v21  ;;  %v3845_v21 = vld [vmem:[#allocation24_spill] sm:$0xff] }
 0x62c   :  { %1586 = vmatprep.subr.mxu0 %v3339_v28  ;;  %2230 = vmatprep.subr.mxu1 %v3799_v42 }
 0x62d   :  { %1587 = vmatpush1.msra.mxu0 %v3346_v48  ;;  %2231 = vmatpush3.msra.mxu1 %v3553_v23 }
 0x62e   :  { %1588 = vmatprep.subr.mxu0 %v3353_v29  ;;  %2232 = vmatprep.subr.mxu1 %v3799_v42 }
 0x62f   :  { %1589 = vmatpush1.msra.mxu0 %v3360_v9  ;;  %2233 = vmatpush3.msra.mxu1 %v3562_v11  ;;  %v3842_v9 = vld [vmem:[#allocation21_spill] sm:$0xff] }
 0x630   :  { %1590 = vmatprep.subr.mxu0 %v3367_v30  ;;  %2234 = vmatprep.subr.mxu1 %v3799_v42 }
 0x631   :  { %1591 = vmatpush1.msra.mxu0 %v3374_v2  ;;  %2235 = vmatpush3.msra.mxu1 %v3571_v46 }
 0x632   :  { %1592 = vmatprep.subr.mxu0 %v3381_v31  ;;  %2236 = vmatprep.subr.mxu1 %v3799_v42 }
 0x633   :  { %1593 = vmatpush1.msra.mxu0 %v3388_v54  ;;  %2237 = vmatpush3.msra.mxu1 %v3580_v47 }
 0x634   :  { %1594 = vmatprep.subr.mxu0 %v3395_v32  ;;  %2238 = vmatprep.subr.mxu1 %v3799_v42 }
 0x635   :  { %1595 = vmatpush1.msra.mxu0 %v3402_v50  ;;  %2239 = vmatpush3.msra.mxu1 %v3589_v49 }
 0x636   :  { %1596 = vmatprep.subr.mxu0 %v3409_v33  ;;  %2240 = vmatprep.subr.mxu1 %v3799_v42 }
 0x637   :  { %1597 = vmatpush1.msra.mxu0 %v3416_v62  ;;  %2241 = vmatpush3.msra.mxu1 %v3598_v51 }
 0x638   :  { %1598 = vmatprep.subr.mxu0 %v3423_v34  ;;  %2242 = vmatprep.subr.mxu1 %v3799_v42  ;;  %v3843_v34 = vld [vmem:[#allocation30_spill] sm:$0xff] }
 0x639   :  { %1599 = vmatpush1.msra.mxu0 %v3430_v22  ;;  %2243 = vmatpush3.msra.mxu1 %v3607_v55 }
 0x63a   :  { %1600 = vmatprep.subr.mxu0 %v3437_v35  ;;  %2244 = vmatprep.subr.mxu1 %v3799_v42 }
 0x63b   :  { %1601 = vmatpush1.msra.mxu0 %v3444_v16  ;;  %2245 = vmatpush3.msra.mxu1 %v3616_v57 }
 0x63c   :  { %1602 = vmatprep.subr.mxu0 %v3451_v36  ;;  %2246 = vmatprep.subr.mxu1 %v3799_v42 }
 0x63d   :  { %1603 = vmatpush1.msra.mxu0 %v3458_v26  ;;  %2247 = vmatpush3.msra.mxu1 %v3625_v58  ;;  %v3846_v58 = vld [vmem:[#allocation29_spill] sm:$0xff] }
 0x63e   :  { %1604 = vmatprep.subr.mxu0 %v3465_v37  ;;  %2248 = vmatprep.subr.mxu1 %v3799_v42 }
 0x63f   :  { %1605 = vmatpush1.msra.mxu0 %v3472_v40  ;;  %2249 = vmatpush3.msra.mxu1 %v3634_v59 }
 0x640   :  { %1606 = vmatprep.subr.mxu0 %v3479_v38  ;;  %2250 = vmatprep.subr.mxu1 %v3799_v42 }
 0x641   :  { %1607 = vmatpush1.msra.mxu0 %v3836_v45  ;;  %2251 = vmatpush3.msra.mxu1 %v3837_v24 }
 0x642   :  { %1608 = vmatprep.subr.mxu0 %v3838_v25  ;;  %2252 = vmatprep.subr.mxu1 %v3799_v42 }
 0x643   :  { %1609 = vmatpush1.msra.mxu0 %v3839_v44  ;;  %1642 = vmatprep.mubr.f32.mxu0 %v3799_v42 }
 0x644   :  { %2253 = vmatpush3.msra.mxu1 %v3840_v3  ;;  %2254 = vmatprep.mubr.msk.f32.mxu1 %vm2389_vm0, %v3799_v42  ;;  %v2387_v42 = vld [vmem:[%s3751_s4] ss:$0 sm:$0xff] }
 0x6e4   :  { %v1476_v41 = vpop.f32.mrf.mxu0  ;;  %v1547_v43 = vpop.f32.mrf.mxu1 }
 0x6e5   :  { %v1551_v5 = vadd.f32 %v1476_v41, %v3841_v27  ;;  %v1565_v50 = vadd.f32 %v2387_v42, %v1547_v43 }
 0x6e6   :  { %v2221_v28 = vpop.f32.mrf.mxu1  ;;  %v1478_v29 = vpop.f32.mrf.mxu0 }
 0x6e7   :  { %v1769_v48 = vmul.f32 -1.442695, %v1551_v5  ;;  %v1558_v30 = vadd.f32 %v1478_v29, %v3842_v9 }
 0x6e9   :  { %2319 = vpow2.f32 %v1769_v48  ;;  %v1770_v2 = vmul.f32 -1.442695, %v1558_v30 }
 0x6eb   :  { %2321 = vpow2.f32 %v1770_v2 }
 0x6f6   :  { %v2320_v31 = vpop.eup %2319 }
 0x6f7   :  { %v1555_v54 = vadd.f32 1.0, %v2320_v31 }
 0x6f8   :  { %v2322_v32 = vpop.eup %2321 }
 0x6f9   :  { %2323 = vrcp.f32 %v1555_v54  ;;  %v1562_v35 = vadd.f32 1.0, %v2322_v32 }
 0x706   :  { %v2324_v33 = vpop.eup %2323 }
 0x707   :  { %v1566_v62 = vmul.f32 %v2324_v33, %v1565_v50 }
 0x709   :  { %v1567_v22 = vadd.f32 %v1566_v62, %v3843_v34 }
 0x70b   :  { %2325 = vtanh.f32 %v1567_v22 }
 0x70c   :  { %2327 = vrcp.f32 %v1562_v35 }
 0x718   :  { %v2326_v16 = vpop.eup %2325 }
 0x719   :  { %v1569_v36 = vsub.f32 %v3665_v7, %v2326_v16  ;;  %v2328_v26 = vpop.eup %2327 }
 0x71b   :  { %v1570_v37 = vmul.f32 %v2328_v26, %v1569_v36 }
 0x71d   :  { %v1571_v40 = vadd.f32 %v2326_v16, %v1570_v37 }
 0x71f   :  { %1643 = vmatmul.mubr.f32.vlgmr.msra.gmra.mxu0 %v1571_v40  ;;  %2255 = vmatmul.mubr.f32.vlgmr.msra.gmra.mxu1 %v1571_v40 }
 0x7df   :  { %v1644_v38 = vpop.f32.mrf.mxu0  ;;  %v1715_v56 = vpop.f32.mrf.mxu1 }
 0x7e0   :  { %v1719_v60 = vadd.f32 %v1644_v38, %v3844_v39  ;;  %v1733_v51 = vadd.f32 %v2387_v42, %v1715_v56 }
 0x7e1   :  { %v2256_v18 = vpop.f32.mrf.mxu1  ;;  %v1646_v20 = vpop.f32.mrf.mxu0 }
 0x7e2   :  { %v1771_v19 = vmul.f32 -1.442695, %v1719_v60  ;;  %v1726_v23 = vadd.f32 %v1646_v20, %v3845_v21 }
 0x7e4   :  { %2329 = vpow2.f32 %v1771_v19  ;;  %v1772_v11 = vmul.f32 -1.442695, %v1726_v23 }
 0x7e6   :  { %2331 = vpow2.f32 %v1772_v11 }
 0x7f1   :  { %v2330_v46 = vpop.eup %2329 }
 0x7f2   :  { %v1723_v47 = vadd.f32 1.0, %v2330_v46 }
 0x7f3   :  { %v2332_v49 = vpop.eup %2331 }
 0x7f4   :  { %2333 = vrcp.f32 %v1723_v47  ;;  %v1730_v61 = vadd.f32 1.0, %v2332_v49 }
 0x801   :  { %v2334_v55 = vpop.eup %2333 }
 0x802   :  { %v1734_v57 = vmul.f32 %v2334_v55, %v1733_v51 }
 0x804   :  { %v1735_v59 = vadd.f32 %v1734_v57, %v3846_v58 }
 0x806   :  { %2335 = vtanh.f32 %v1735_v59 }
 0x807   :  { %2337 = vrcp.f32 %v1730_v61 }
 0x813   :  { %v2336_v63 = vpop.eup %2335 }
 0x814   :  { %v1737_v52 = vsub.f32 %v1571_v40, %v2336_v63  ;;  %v2338_v8 = vpop.eup %2337 }
 0x816   :  { %v1738_v10 = vmul.f32 %v2338_v8, %v1737_v52 }
 0x818   :  { %v1739_v12 = vadd.f32 %v2336_v63, %v1738_v10 }
 0x81a   :  { %1744 = vst [vmem:[%s3752_s5] sm:$0xff] %v1739_v12 }

</bundles_post_ra>
